<compile_context>
chip_gen: v6e
topology: v6e:2x2x1
jax: 0.10.0
libtpu: 0.0.40
codegen_flags: <defaults>
</compile_context>

<pallas_src>
import functools
import math

import jax
import jax.numpy as jnp
from jax.experimental import pallas as pl
from jax.experimental.pallas import tpu as pltpu


# ----------------------------------------------------------------------------
# helpers
# ----------------------------------------------------------------------------
def _relu(x):
    return jnp.maximum(x, 0.0)


def _sigmoid(x):
    # numerically stable sigmoid via tanh (EUP op, no overflow for large |x|)
    return 0.5 * (jnp.tanh(0.5 * x) + 1.0)


def _w2(a):
    """Full-array BlockSpec for a 2-D weight/bias under a 1-D grid."""
    return pl.BlockSpec(a.shape, lambda i: (0, 0))


def _init_linear(key, fan_in, fan_out):
    """Deterministic torch-Linear-like init: U(-1/sqrt(fan_in), 1/sqrt(fan_in))."""
    kw, kb = jax.random.split(key)
    bound = 1.0 / math.sqrt(fan_in)
    w = jax.random.uniform(kw, (fan_in, fan_out), jnp.float32, -bound, bound)
    b = jax.random.uniform(kb, (1, fan_out), jnp.float32, -bound, bound)
    return w, b


def _init_ffn(key, dims):
    """dims = [in, hidden, ..., out]; returns list of (w, b) with w stored (in, out)."""
    params = []
    for n, k in zip(dims[:-1], dims[1:]):
        key, sub = jax.random.split(key)
        params.append(_init_linear(sub, n, k))
    return params


def _split(x, sizes, axis):
    outs, off = [], 0
    for s in sizes:
        outs.append(jax.lax.slice_in_dim(x, off, off + s, axis=axis))
        off += s
    return outs


def compute_locations(tgt_shape, stride=1):
    """Same math as PivotMapOutputHead.compute_locations (torch meshgrid 'ij')."""
    fh, fw = tgt_shape
    shifts_x = jnp.arange(0, fw * stride, step=stride, dtype=jnp.float32)
    shifts_y = jnp.arange(0, fh * stride, step=stride, dtype=jnp.float32)
    shift_y, shift_x = jnp.meshgrid(shifts_y, shifts_x, indexing="ij")
    shift_x = shift_x.reshape(-1)
    shift_y = shift_y.reshape(-1)
    locations = jnp.stack((shift_x, shift_y), axis=1) + (stride // 2)      # (fh*fw, 2)
    locations = locations[None].transpose(0, 2, 1).reshape(1, 2, fh, fw)   # (1, 2, fh, fw)
    denom = jnp.array([fw, fh], dtype=jnp.float32).reshape(1, 2, 1, 1)
    return locations / denom


# ----------------------------------------------------------------------------
# Kernel 1: coords_head FFN ('conv' == per-pixel 1x1 linears) fused with the
# spatial mean.  mean_HW(feat @ cf) == feat @ mean_HW(cf), so the downstream
# class head only ever needs the (1, C) spatial mean.  Coords are identical
# for every batch element, so this runs once per forward on HW rows, tiled
# over rows with an accumulator output (reduction grid axis).
# ----------------------------------------------------------------------------
def _coords_mean_kernel(x_ref, w1_ref, b1_ref, w2_ref, b2_ref, w3_ref, b3_ref,
                        o_ref, *, total_rows, tile_rows):
    i = pl.program_id(0)

    @pl.when(i == 0)
    def _():
        o_ref[...] = jnp.zeros_like(o_ref)

    x = x_ref[...]                                   # (TR, 2)
    w1 = w1_ref[...]                                 # (2, 256)
    # first layer has K=2: broadcast-multiply instead of a degenerate matmul
    h = x[:, 0:1] * w1[0:1, :] + x[:, 1:2] * w1[1:2, :] + b1_ref[...]
    h = _relu(h)
    h = _relu(jnp.dot(h, w2_ref[...], preferred_element_type=jnp.float32) + b2_ref[...])
    y = jnp.dot(h, w3_ref[...], preferred_element_type=jnp.float32) + b3_ref[...]   # (TR, C)

    # mask rows of the (possibly padded) last tile so they don't pollute the sum
    row = i * tile_rows + jax.lax.broadcasted_iota(jnp.int32, y.shape, 0)
    y = jnp.where(row < total_rows, y, 0.0)
    o_ref[...] += jnp.sum(y, axis=0, keepdims=True)

    @pl.when(i == pl.num_programs(0) - 1)
    def _():
        o_ref[...] = o_ref[...] * (1.0 / float(total_rows))


def coords_mean_apply(coords_2d, params, *, max_tile=1024):
    (w1, b1), (w2, b2), (w3, b3) = params
    R = coords_2d.shape[0]
    C = w3.shape[1]
    tr = R if R <= max_tile else max_tile            # max_tile is a multiple of 8
    grid = (pl.cdiv(R, tr),)
    kernel = functools.partial(_coords_mean_kernel, total_rows=R, tile_rows=tr)
    return pl.pallas_call(
        kernel,
        out_shape=jax.ShapeDtypeStruct((1, C), jnp.float32),
        grid=grid,
        in_specs=[pl.BlockSpec((tr, 2), lambda i: (i, 0)),
                  _w2(w1), _w2(b1), _w2(w2), _w2(b2), _w2(w3), _w2(b3)],
        out_specs=pl.BlockSpec((1, C), lambda i: (0, 0)),
        compiler_params=pltpu.CompilerParams(dimension_semantics=("arbitrary",)),
    )(coords_2d, w1, b1, w2, b2, w3, b3)


# ----------------------------------------------------------------------------
# Kernel 2: fused per-class head on flattened rows (decoders * batch * Nqp):
#   im_ctr FFN -> (fused-GAP) sigmoid(im_feats @ W_coord)  -> ctr   (2 cols)
#             -> pts_cls FFN                               -> pts   (2 cols)
# Both outputs are written as one lane-fused (rows, 4) slab.
# W_coord is the (2C, 2) block matrix [[cf_mean, 0], [0, cf_mean]] built in
# the wrapper, which also avoids any in-kernel lane slicing of im_feats.
# ----------------------------------------------------------------------------
def _class_head_kernel(x_ref,
                       iw1_ref, ib1_ref, iw2_ref, ib2_ref, iw3_ref, ib3_ref,
                       wc_ref,
                       pw1_ref, pb1_ref, pw2_ref, pb2_ref, pw3_ref, pb3_ref,
                       o_ref):
    x = x_ref[...]                                                        # (TR, Din)
    h = _relu(jnp.dot(x, iw1_ref[...], preferred_element_type=jnp.float32) + ib1_ref[...])
    h = _relu(jnp.dot(h, iw2_ref[...], preferred_element_type=jnp.float32) + ib2_ref[...])
    im_feats = jnp.dot(h, iw3_ref[...], preferred_element_type=jnp.float32) + ib3_ref[...]   # (TR, 2C)

    # GAP fused algebraically: sigmoid(mean_HW(feat @ cf)) == sigmoid(feat @ mean_HW(cf))
    ctr = _sigmoid(jnp.dot(im_feats, wc_ref[...], preferred_element_type=jnp.float32))        # (TR, 2)

    p = _relu(jnp.dot(im_feats, pw1_ref[...], preferred_element_type=jnp.float32) + pb1_ref[...])
    p = _relu(jnp.dot(p, pw2_ref[...], preferred_element_type=jnp.float32) + pb2_ref[...])
    pt = jnp.dot(p, pw3_ref[...], preferred_element_type=jnp.float32) + pb3_ref[...]          # (TR, 2)

    o_ref[...] = jnp.concatenate([ctr, pt], axis=-1)                      # single (TR, 4) store


def class_head_apply(x2d, im_params, pts_params, w_coord, *, max_tile=512):
    (iw1, ib1), (iw2, ib2), (iw3, ib3) = im_params
    (pw1, pb1), (pw2, pb2), (pw3, pb3) = pts_params
    R, Din = x2d.shape
    tr = R if R <= max_tile else max_tile            # max_tile is a multiple of 8
    grid = (pl.cdiv(R, tr),)
    return pl.pallas_call(
        _class_head_kernel,
        out_shape=jax.ShapeDtypeStruct((R, 4), jnp.float32),
        grid=grid,
        in_specs=[pl.BlockSpec((tr, Din), lambda i: (i, 0)),
                  _w2(iw1), _w2(ib1), _w2(iw2), _w2(ib2), _w2(iw3), _w2(ib3),
                  _w2(w_coord),
                  _w2(pw1), _w2(pb1), _w2(pw2), _w2(pb2), _w2(pw3), _w2(pb3)],
        out_specs=pl.BlockSpec((tr, 4), lambda i: (i, 0)),
        compiler_params=pltpu.CompilerParams(dimension_semantics=("parallel",)),
    )(x2d, iw1, ib1, iw2, ib2, iw3, ib3, w_coord, pw1, pb1, pw2, pb2, pw3, pb3)


# ----------------------------------------------------------------------------
# Kernel 3: 1x1 conv (semantic heads) as a row-tiled flat matmul + bias.
# All per-class (bevC, 2) weights are concatenated into one (bevC, 2*Ncls)
# matrix in the wrapper so there is a single call per decoder feature.
# ----------------------------------------------------------------------------
def _conv1x1_kernel(x_ref, w_ref, b_ref, o_ref):
    o_ref[...] = jnp.dot(x_ref[...], w_ref[...], preferred_element_type=jnp.float32) + b_ref[...]


def conv1x1_apply(x2d, w, b, *, max_tile=1024):
    R, K = x2d.shape
    Cout = w.shape[1]
    tr = R if R <= max_tile else max_tile            # max_tile is a multiple of 8
    grid = (pl.cdiv(R, tr),)
    return pl.pallas_call(
        _conv1x1_kernel,
        out_shape=jax.ShapeDtypeStruct((R, Cout), jnp.float32),
        grid=grid,
        in_specs=[pl.BlockSpec((tr, K), lambda i: (i, 0)), _w2(w), _w2(b)],
        out_specs=pl.BlockSpec((tr, Cout), lambda i: (i, 0)),
        compiler_params=pltpu.CompilerParams(dimension_semantics=("parallel",)),
    )(x2d, w, b)


# ----------------------------------------------------------------------------
# The module
# ----------------------------------------------------------------------------
class PivotMapOutputHeadPallas:
    def __init__(self, in_channel, num_queries, tgt_shape, max_pieces,
                 bev_channels=-1, ins_channel=64, key=None):
        if key is None:
            key = jax.random.PRNGKey(0)
        self.num_queries = list(num_queries)
        self.num_classes = len(num_queries)
        self.tgt_shape = tuple(tgt_shape)
        self.bev_channels = bev_channels
        self.max_pieces = list(max_pieces)
        self.ins_channel = ins_channel
        self.pts_split = [num_queries[i] * max_pieces[i] for i in range(self.num_classes)]

        n_keys = 3 * self.num_classes + 1
        keys = iter(jax.random.split(key, n_keys))
        _C = ins_channel
        # FFN(in_channel, 256, 2*_C, 3)
        self.im_ctr_params = [_init_ffn(next(keys), [in_channel, 256, 256, 2 * _C])
                              for _ in range(self.num_classes)]
        # FFN(2*_C, 2*_C, 2, 3)
        self.pts_cls_params = [_init_ffn(next(keys), [2 * _C, 2 * _C, 2 * _C, 2])
                               for _ in range(self.num_classes)]
        # FFN(2, 256, _C, 3, 'conv')  (1x1 convs == per-pixel linears)
        self.coords_head_params = _init_ffn(next(keys), [2, 256, 256, _C])
        # semantic heads: Conv2d(bev_channels, 2, 1), concatenated across classes
        self.semantic_params = None
        self.w_sem_cat = None
        self.b_sem_cat = None
        if bev_channels > 0:
            self.semantic_params = [_init_linear(next(keys), bev_channels, 2)
                                    for _ in range(self.num_classes)]
            self.w_sem_cat = jnp.concatenate([w for w, _ in self.semantic_params], axis=1)
            self.b_sem_cat = jnp.concatenate([b for _, b in self.semantic_params], axis=1)
        self.coords = compute_locations(self.tgt_shape)   # (1, 2, fh, fw)

    def up_sample(self, x, tgt_shape=None):
        tgt_shape = self.tgt_shape if tgt_shape is None else tgt_shape
        if tuple(x.shape[-2:]) == tuple(tgt_shape):
            return x
        # TODO(synk): bilinear align_corners=True resize not implemented as a Pallas kernel;
        # inputs in this synthetic setup are already at tgt_shape.
        raise NotImplementedError("bilinear up_sample not implemented")

    def forward(self, inputs):
        mask_features = inputs["mask_features"]
        obj_scores = inputs["obj_scores"]
        decoder_outputs = inputs["decoder_outputs"]
        num_decoders = len(mask_features)
        B = mask_features[0].shape[0]
        fh, fw = self.tgt_shape
        HW = fh * fw
        _C = self.ins_channel

        dt_obj_logit = [[None] * self.num_classes for _ in range(num_decoders)]
        dt_ins_masks = [[None] * self.num_classes for _ in range(num_decoders)]
        im_ctr_coord = [[None] * self.num_classes for _ in range(num_decoders)]
        dt_pivots_logits = [[None] * self.num_classes for _ in range(num_decoders)]

        # coords head: batch-independent, computed once on HW rows, fused with
        # the spatial mean (GAP fusion).  cf_mean: (1, C)
        coords_2d = self.coords[0].transpose(1, 2, 0).reshape(HW, 2)
        cf_mean = coords_mean_apply(coords_2d, self.coords_head_params)
        cfm = cf_mean.reshape(-1)
        zero = jnp.zeros_like(cfm)
        w_coord = jnp.stack([jnp.concatenate([cfm, zero]),
                             jnp.concatenate([zero, cfm])], axis=1)          # (2C, 2)

        # pass-through slices (no compute)
        for i in range(num_decoders):
            x_ins_cw = _split(mask_features[i], self.num_queries, axis=1)
            x_obj_cw = _split(obj_scores[i], self.num_queries, axis=1)
            for j in range(self.num_classes):
                dt_ins_masks[i][j] = self.up_sample(x_ins_cw[j])
                dt_obj_logit[i][j] = x_obj_cw[j]

        # class heads: weights shared across decoders -> one batched call per class
        for j in range(self.num_classes):
            nq, npc = self.num_queries[j], self.max_pieces[j]
            nqp = nq * npc
            xj = jnp.stack([_split(decoder_outputs[i], self.pts_split, axis=1)[j]
                            for i in range(num_decoders)], axis=0)           # (D, B, Nqp, Din)
            din = xj.shape[-1]
            out4 = class_head_apply(xj.reshape(num_decoders * B * nqp, din),
                                    self.im_ctr_params[j], self.pts_cls_params[j],
                                    w_coord)                                 # (D*B*Nqp, 4)
            out4 = out4.reshape(num_decoders, B, nq, npc, 4)
            for i in range(num_decoders):
                im_ctr_coord[i][j] = out4[i, ..., 0:2]
                dt_pivots_logits[i][j] = out4[i, ..., 2:4]

        ret = {"outputs": {"obj_logits": dt_obj_logit, "ins_masks": dt_ins_masks,
                           "ctr_im": im_ctr_coord, "pts_logits": dt_pivots_logits}}

        if self.semantic_params is not None:
            bev_feats = inputs["bev_enc_features"]
            nd = len(bev_feats)
            dt_sem_masks = [[None] * self.num_classes for _ in range(nd)]
            for i in range(nd):
                x_sem = bev_feats[i]                                         # (B, bevC, H, W)
                Bs, Cs, Hs, Ws = x_sem.shape
                x_flat = x_sem.transpose(0, 2, 3, 1).reshape(Bs * Hs * Ws, Cs)
                y = conv1x1_apply(x_flat, self.w_sem_cat, self.b_sem_cat)    # (R, 2*Ncls)
                y = y.reshape(Bs, Hs, Ws, 2 * self.num_classes)
                for j in range(self.num_classes):
                    yj = y[..., 2 * j:2 * j + 2].transpose(0, 3, 1, 2)       # (B, 2, H, W)
                    dt_sem_masks[i][j] = self.up_sample(yj)
            ret["outputs"].update({"sem_masks": dt_sem_masks})
        return ret


# ----------------------------------------------------------------------------
# demo / test
# ----------------------------------------------------------------------------
if __name__ == "__main__":
    B = 2
    in_channel = 32
    num_queries = [4, 4]
    max_pieces = [2, 3]
    tgt_shape = (16, 16)
    bev_channels = 8
    ins_channel = 8
    num_decoders = 2

    head = PivotMapOutputHeadPallas(
        in_channel, num_queries, tgt_shape, max_pieces,
        bev_channels=bev_channels, ins_channel=ins_channel,
        key=jax.random.PRNGKey(42))

    total_q = sum(num_queries)
    total_pts = sum(q * p for q, p in zip(num_queries, max_pieces))

    root = jax.random.PRNGKey(0)
    ks = jax.random.split(root, 4 * num_decoders)
    inputs = {
        "mask_features": [jax.random.normal(ks[i], (B, total_q, *tgt_shape), jnp.float32)
                          for i in range(num_decoders)],
        "obj_scores": [jax.random.normal(ks[num_decoders + i], (B, total_q, 3), jnp.float32)
                       for i in range(num_decoders)],
        "decoder_outputs": [jax.random.normal(ks[2 * num_decoders + i],
                                              (B, total_pts, in_channel), jnp.float32)
                            for i in range(num_decoders)],
        "bev_enc_features": [jax.random.normal(ks[3 * num_decoders + i],
                                               (B, bev_channels, *tgt_shape), jnp.float32)
                             for i in range(num_decoders)],
    }

    ret = head.forward(inputs)
    for leaf in jax.tree_util.tree_leaves(ret):
        jax.block_until_ready(leaf)

    out = ret["outputs"]
    assert out["ctr_im"][0][0].shape == (B, num_queries[0], max_pieces[0], 2)
    assert out["ctr_im"][1][1].shape == (B, num_queries[1], max_pieces[1], 2)
    assert out["pts_logits"][0][1].shape == (B, num_queries[1], max_pieces[1], 2)
    assert out["ins_masks"][0][0].shape == (B, num_queries[0], *tgt_shape)
    assert out["obj_logits"][0][0].shape == (B, num_queries[0], 3)
    assert out["sem_masks"][0][0].shape == (B, 2, *tgt_shape)
    assert bool(jnp.all(out["ctr_im"][0][0] >= 0.0) & jnp.all(out["ctr_im"][0][0] <= 1.0))
    assert all(bool(jnp.all(jnp.isfinite(leaf))) for leaf in jax.tree_util.tree_leaves(out))

    print("KERNEL_OK")
</pallas_src>

<mosaic_0001>
module attributes {stable_mosaic.version = 11 : i64} {
  func.func @_coords_mean_kernel(%arg0: i32, %arg1: memref<256x2xf32, #tpu.memory_space<vmem>>, %arg2: memref<2x256xf32, #tpu.memory_space<vmem>>, %arg3: memref<1x256xf32, #tpu.memory_space<vmem>>, %arg4: memref<256x256xf32, #tpu.memory_space<vmem>>, %arg5: memref<1x256xf32, #tpu.memory_space<vmem>>, %arg6: memref<256x8xf32, #tpu.memory_space<vmem>>, %arg7: memref<1x8xf32, #tpu.memory_space<vmem>>, %arg8: memref<1x8xf32, #tpu.memory_space<vmem>>) attributes {dimension_semantics = [#tpu.dimension_semantics<arbitrary>], iteration_bounds = array<i64: 1>, scalar_prefetch = 0 : i64, scratch_operands = 0 : i64, tpu.core_type = #tpu.core_type<tc>, window_params = [{transform_indices = @transform_0, window_bounds = array<i64: 256, 2>}, {pipeline_mode = #tpu.pipeline_mode<synchronous>, transform_indices = @transform_1, window_bounds = array<i64: 2, 256>}, {pipeline_mode = #tpu.pipeline_mode<synchronous>, transform_indices = @transform_2, window_bounds = array<i64: 1, 256>}, {pipeline_mode = #tpu.pipeline_mode<synchronous>, transform_indices = @transform_3, window_bounds = array<i64: 256, 256>}, {pipeline_mode = #tpu.pipeline_mode<synchronous>, transform_indices = @transform_4, window_bounds = array<i64: 1, 256>}, {pipeline_mode = #tpu.pipeline_mode<synchronous>, transform_indices = @transform_5, window_bounds = array<i64: 256, 8>}, {pipeline_mode = #tpu.pipeline_mode<synchronous>, transform_indices = @transform_6, window_bounds = array<i64: 1, 8>}, {pipeline_mode = #tpu.pipeline_mode<synchronous>, transform_indices = @transform_7, window_bounds = array<i64: 1, 8>}]} {
    %c0_i32 = arith.constant 0 : i32
    %0 = arith.cmpi eq, %arg0, %c0_i32 : i32
    %1 = arith.extui %0 : i1 to i32
    %c0_i32_0 = arith.constant 0 : i32
    %2 = arith.cmpi ne, %1, %c0_i32_0 : i32
    scf.if %2 {
      %cst_26 = arith.constant 0.000000e+00 : f32
      %49 = vector.broadcast %cst_26 : f32 to vector<1x8xf32>
      %c0_27 = arith.constant 0 : index
      %c0_28 = arith.constant 0 : index
      %50 = vector.load %arg8[%c0_27, %c0_28] : memref<1x8xf32, #tpu.memory_space<vmem>>, vector<1x8xf32>
      tpu.vector_store %arg8[%c0_27, %c0_28], %49 {strides = array<i32>} : memref<1x8xf32, #tpu.memory_space<vmem>>, vector<1x8xf32>,
    } else {
    }
    %c0 = arith.constant 0 : index
    %c0_1 = arith.constant 0 : index
    %3 = vector.load %arg1[%c0, %c0_1] : memref<256x2xf32, #tpu.memory_space<vmem>>, vector<256x2xf32>
    %c0_2 = arith.constant 0 : index
    %c0_3 = arith.constant 0 : index
    %4 = vector.load %arg2[%c0_2, %c0_3] : memref<2x256xf32, #tpu.memory_space<vmem>>, vector<2x256xf32>
    %5 = vector.extract_strided_slice %3 {offsets = [0, 0], sizes = [256, 1], strides = [1, 1]} : vector<256x2xf32> to vector<256x1xf32>
    %6 = vector.extract_strided_slice %4 {offsets = [0, 0], sizes = [1, 256], strides = [1, 1]} : vector<2x256xf32> to vector<1x256xf32>
    %7 = vector.broadcast %5 : vector<256x1xf32> to vector<256x256xf32>
    %8 = vector.broadcast %6 : vector<1x256xf32> to vector<256x256xf32>
    %9 = arith.mulf %7, %8 : vector<256x256xf32>
    %10 = vector.extract_strided_slice %3 {offsets = [0, 1], sizes = [256, 1], strides = [1, 1]} : vector<256x2xf32> to vector<256x1xf32>
    %11 = vector.extract_strided_slice %4 {offsets = [1, 0], sizes = [1, 256], strides = [1, 1]} : vector<2x256xf32> to vector<1x256xf32>
    %12 = vector.broadcast %10 : vector<256x1xf32> to vector<256x256xf32>
    %13 = vector.broadcast %11 : vector<1x256xf32> to vector<256x256xf32>
    %14 = arith.mulf %12, %13 : vector<256x256xf32>
    %15 = arith.addf %9, %14 : vector<256x256xf32>
    %c0_4 = arith.constant 0 : index
    %c0_5 = arith.constant 0 : index
    %16 = vector.load %arg3[%c0_4, %c0_5] : memref<1x256xf32, #tpu.memory_space<vmem>>, vector<1x256xf32>
    %17 = vector.broadcast %16 : vector<1x256xf32> to vector<256x256xf32>
    %18 = arith.addf %15, %17 : vector<256x256xf32>
    %cst = arith.constant 0.000000e+00 : f32
    %19 = vector.broadcast %cst : f32 to vector<256x256xf32>
    %20 = arith.maximumf %18, %19 : vector<256x256xf32>
    %c0_6 = arith.constant 0 : index
    %c0_7 = arith.constant 0 : index
    %21 = vector.load %arg4[%c0_6, %c0_7] : memref<256x256xf32, #tpu.memory_space<vmem>>, vector<256x256xf32>
    %cst_8 = arith.constant dense<0.000000e+00> : vector<256x256xf32>
    %22 = tpu.matmul %20, %21, %cst_8 {dimension_numbers = #tpu.dot_dimension_numbers<[1], [0], [0], [1], [0, 0, 1, 1], [], []>} : vector<256x256xf32>, vector<256x256xf32>, vector<256x256xf32> -> vector<256x256xf32>
    %c0_9 = arith.constant 0 : index
    %c0_10 = arith.constant 0 : index
    %23 = vector.load %arg5[%c0_9, %c0_10] : memref<1x256xf32, #tpu.memory_space<vmem>>, vector<1x256xf32>
    %24 = vector.broadcast %23 : vector<1x256xf32> to vector<256x256xf32>
    %25 = arith.addf %22, %24 : vector<256x256xf32>
    %cst_11 = arith.constant 0.000000e+00 : f32
    %26 = vector.broadcast %cst_11 : f32 to vector<256x256xf32>
    %27 = arith.maximumf %25, %26 : vector<256x256xf32>
    %c0_12 = arith.constant 0 : index
    %c0_13 = arith.constant 0 : index
    %28 = vector.load %arg6[%c0_12, %c0_13] : memref<256x8xf32, #tpu.memory_space<vmem>>, vector<256x8xf32>
    %cst_14 = arith.constant dense<0.000000e+00> : vector<256x8xf32>
    %29 = tpu.matmul %27, %28, %cst_14 {dimension_numbers = #tpu.dot_dimension_numbers<[1], [0], [0], [1], [0, 0, 1, 1], [], []>} : vector<256x256xf32>, vector<256x8xf32>, vector<256x8xf32> -> vector<256x8xf32>
    %c0_15 = arith.constant 0 : index
    %c0_16 = arith.constant 0 : index
    %30 = vector.load %arg7[%c0_15, %c0_16] : memref<1x8xf32, #tpu.memory_space<vmem>>, vector<1x8xf32>
    %31 = vector.broadcast %30 : vector<1x8xf32> to vector<256x8xf32>
    %32 = arith.addf %29, %31 : vector<256x8xf32>
    %c256_i32 = arith.constant 256 : i32
    %33 = arith.muli %arg0, %c256_i32 : i32
    %34 = tpu.iota {dimensions = array<i32: 0>} : vector<256x8xi32>
    %35 = vector.broadcast %33 : i32 to vector<256x8xi32>
    %36 = arith.addi %35, %34 : vector<256x8xi32>
    %c256_i32_17 = arith.constant 256 : i32
    %37 = vector.broadcast %c256_i32_17 : i32 to vector<256x8xi32>
    %38 = arith.cmpi slt, %36, %37 : vector<256x8xi32>
    %cst_18 = arith.constant 0.000000e+00 : f32
    %39 = vector.broadcast %cst_18 : f32 to vector<256x8xf32>
    %40 = arith.select %38, %32, %39 : vector<256x8xi1>, vector<256x8xf32>
    %c0_19 = arith.constant 0 : index
    %c0_20 = arith.constant 0 : index
    %41 = vector.load %arg8[%c0_19, %c0_20] : memref<1x8xf32, #tpu.memory_space<vmem>>, vector<1x8xf32>
    %cst_21 = arith.constant dense<0.000000e+00> : vector<8xf32>
    %42 = vector.multi_reduction <add>, %40, %cst_21 [0] : vector<256x8xf32> to vector<8xf32>
    %43 = vector.shape_cast %42 : vector<8xf32> to vector<1x8xf32>
    %44 = arith.addf %41, %43 : vector<1x8xf32>
    %c0_22 = arith.constant 0 : index
    %c0_23 = arith.constant 0 : index
    %45 = vector.load %arg8[%c0_22, %c0_23] : memref<1x8xf32, #tpu.memory_space<vmem>>, vector<1x8xf32>
    tpu.vector_store %arg8[%c0_22, %c0_23], %44 {strides = array<i32>} : memref<1x8xf32, #tpu.memory_space<vmem>>, vector<1x8xf32>,
    %c0_i32_24 = arith.constant 0 : i32
    %46 = arith.cmpi eq, %arg0, %c0_i32_24 : i32
    %47 = arith.extui %46 : i1 to i32
    %c0_i32_25 = arith.constant 0 : i32
    %48 = arith.cmpi ne, %47, %c0_i32_25 : i32
    scf.if %48 {
      %c0_26 = arith.constant 0 : index
      %c0_27 = arith.constant 0 : index
      %49 = vector.load %arg8[%c0_26, %c0_27] : memref<1x8xf32, #tpu.memory_space<vmem>>, vector<1x8xf32>
      %cst_28 = arith.constant 3.906250e-03 : f32
      %50 = vector.broadcast %cst_28 : f32 to vector<1x8xf32>
      %51 = arith.mulf %49, %50 : vector<1x8xf32>
      %c0_29 = arith.constant 0 : index
      %c0_30 = arith.constant 0 : index
      %52 = vector.load %arg8[%c0_29, %c0_30] : memref<1x8xf32, #tpu.memory_space<vmem>>, vector<1x8xf32>
      tpu.vector_store %arg8[%c0_29, %c0_30], %51 {strides = array<i32>} : memref<1x8xf32, #tpu.memory_space<vmem>>, vector<1x8xf32>,
    } else {
    }
    return
  }
  func.func @transform_0(%arg0: i32) -> (i32, i32) {
    %c0_i32 = arith.constant 0 : i32
    %c0_i32_0 = arith.constant 0 : i32
    return %arg0, %c0_i32 : i32, i32
  }
  func.func @transform_1(%arg0: i32) -> (i32, i32) {
    %c0_i32 = arith.constant 0 : i32
    %c0_i32_0 = arith.constant 0 : i32
    %c0_i32_1 = arith.constant 0 : i32
    return %c0_i32, %c0_i32_0 : i32, i32
  }
  func.func @transform_2(%arg0: i32) -> (i32, i32) {
    %c0_i32 = arith.constant 0 : i32
    %c0_i32_0 = arith.constant 0 : i32
    %c0_i32_1 = arith.constant 0 : i32
    return %c0_i32, %c0_i32_0 : i32, i32
  }
  func.func @transform_3(%arg0: i32) -> (i32, i32) {
    %c0_i32 = arith.constant 0 : i32
    %c0_i32_0 = arith.constant 0 : i32
    %c0_i32_1 = arith.constant 0 : i32
    return %c0_i32, %c0_i32_0 : i32, i32
  }
  func.func @transform_4(%arg0: i32) -> (i32, i32) {
    %c0_i32 = arith.constant 0 : i32
    %c0_i32_0 = arith.constant 0 : i32
    %c0_i32_1 = arith.constant 0 : i32
    return %c0_i32, %c0_i32_0 : i32, i32
  }
  func.func @transform_5(%arg0: i32) -> (i32, i32) {
    %c0_i32 = arith.constant 0 : i32
    %c0_i32_0 = arith.constant 0 : i32
    %c0_i32_1 = arith.constant 0 : i32
    return %c0_i32, %c0_i32_0 : i32, i32
  }
  func.func @transform_6(%arg0: i32) -> (i32, i32) {
    %c0_i32 = arith.constant 0 : i32
    %c0_i32_0 = arith.constant 0 : i32
    %c0_i32_1 = arith.constant 0 : i32
    return %c0_i32, %c0_i32_0 : i32, i32
  }
  func.func @transform_7(%arg0: i32) -> (i32, i32) {
    %c0_i32 = arith.constant 0 : i32
    %c0_i32_0 = arith.constant 0 : i32
    %c0_i32_1 = arith.constant 0 : i32
    return %c0_i32, %c0_i32_0 : i32, i32
  }
}

</mosaic_0001>

<bundles_post_ra>
// kernel: tpu_custom_call.1
= control target key start
LH: loop header
LB: loop body
LE: loop exit
PB: predicated region body
PF: predicated region fallthrough
CT: control target
= control target key end

     0   :  { %v1641_v2 = vmov 0   ;;  %v1642_v3 = vmov 1   ;;  %s2472_s0 = inlined_call_operand.vmem [shape: f32[256,2], index: 0, kind: input, shape index: {}]   ;;  %s2473_s1 = inlined_call_operand.vmem [shape: f32[2,256], index: 1, kind: input, shape index: {}]   ;;  %s2474_s2 = inlined_call_operand.vmem [shape: f32[1,256], index: 2, kind: input, shape index: {}]   ;;  %s2475_s3 = inlined_call_operand.vmem [shape: f32[256,256], index: 3, kind: input, shape index: {}]   ;;  %s2476_s4 = inlined_call_operand.vmem [shape: f32[1,256], index: 4, kind: input, shape index: {}]   ;;  %s2477_s5 = inlined_call_operand.vmem [shape: f32[256,8], index: 5, kind: input, shape index: {}]   ;;  %s2478_s6 = inlined_call_operand.vmem [shape: f32[1,8], index: 6, kind: input, shape index: {}]   ;;  %s2479_s7 = inlined_call_operand.hbm [shape: f32[1,8], index: 7, kind: output, shape index: {}]  }
   0x1   :  { %v34_v0 = vld [vmem:[%s2472_s0 + $0x8] sm:$0xff]  ;;  %v33_v1 = vld [vmem:[%s2472_s0] sm:$0xff]  ;;  %1616 = vset.pattern.permute.xlu1 %v1641_v2  ;;  %1614 = vset.pattern.permute.xlu0 %v1641_v2  ;;  %v754_v4 = vld [vmem:[%s2475_s3 + $0xf8] sm:$0xff] }
   0x2   :  { %73 = vperm.xlu1 %1616, %v34_v0   ;;  %68 = vperm.xlu0 %1614, %v33_v1   ;;  %v753_v5 = vld [vmem:[%s2475_s3 + $0xf0] sm:$0xff]  ;;  %v752_v6 = vld [vmem:[%s2475_s3 + $0xe8] sm:$0xff]  ;;  %v751_v8 = vld [vmem:[%s2475_s3 + $0xe0] sm:$0xff] }
   0x3   :  { %v35_v7 = vld [vmem:[%s2472_s0 + $0x10] sm:$0xff]  ;;  %799 = vmatprep.subr.mxu0 %v754_v4  ;;  %v750_v9 = vld [vmem:[%s2475_s3 + $0xd8] sm:$0xff]  ;;  %v748_v12 = vld [vmem:[%s2475_s3 + $0xc8] sm:$0xff] }
   0x4   :  { %800 = vmatpush1.msra.mxu0 %v753_v5  ;;  %v749_v10 = vld [vmem:[%s2475_s3 + $0xd0] sm:$0xff]  ;;  %v36_v11 = vld [vmem:[%s2472_s0 + $0x18] sm:$0xff]  ;;  %v747_v13 = vld [vmem:[%s2475_s3 + $0xc0] sm:$0xff] }
   0x5   :  { %801 = vmatprep.subr.mxu0 %v752_v6  ;;  %v746_v14 = vld [vmem:[%s2475_s3 + $0xb8] sm:$0xff]  ;;  %v745_v15 = vld [vmem:[%s2475_s3 + $0xb0] sm:$0xff]  ;;  %v37_v16 = vld [vmem:[%s2472_s0 + $0x20] sm:$0xff] }
   0x6   :  { %1617 = vset.pattern.permute.xlu1 %v1642_v3  ;;  %1615 = vset.pattern.permute.xlu0 %v1642_v3  ;;  %v744_v17 = vld [vmem:[%s2475_s3 + $0xa8] sm:$0xff]  ;;  %v743_v18 = vld [vmem:[%s2475_s3 + $0xa0] sm:$0xff]  ;;  %v742_v19 = vld [vmem:[%s2475_s3 + $0x98] sm:$0xff] }
   0x7   :  { %314 = vperm.xlu1 %1617, %v34_v0   ;;  %310 = vperm.xlu0 %1615, %v33_v1   ;;  %v741_v20 = vld [vmem:[%s2475_s3 + $0x90] sm:$0xff]  ;;  %v38_v21 = vld [vmem:[%s2472_s0 + $0x28] sm:$0xff]  ;;  %v739_v23 = vld [vmem:[%s2475_s3 + $0x80] sm:$0xff] }
   0x8   :  { %802 = vmatpush1.msra.mxu0 %v751_v8  ;;  %v740_v22 = vld [vmem:[%s2475_s3 + $0x88] sm:$0xff]  ;;  %v738_v24 = vld [vmem:[%s2475_s3 + $0x78] sm:$0xff]  ;;  %v737_v25 = vld [vmem:[%s2475_s3 + $0x70] sm:$0xff] }
   0x9   :  { %803 = vmatprep.subr.mxu0 %v750_v9  ;;  %v39_v26 = vld [vmem:[%s2472_s0 + $0x30] sm:$0xff]  ;;  %v736_v27 = vld [vmem:[%s2475_s3 + $0x68] sm:$0xff]  ;;  %v735_v28 = vld [vmem:[%s2475_s3 + $0x60] sm:$0xff] }
   0xa   :  { %804 = vmatpush1.msra.mxu0 %v749_v10  ;;  %v734_v29 = vld [vmem:[%s2475_s3 + $0x58] sm:$0xff]  ;;  %v733_v30 = vld [vmem:[%s2475_s3 + $0x50] sm:$0xff]  ;;  %v732_v32 = vld [vmem:[%s2475_s3 + $0x48] sm:$0xff] }
   0xb   :  { %1618 = vset.pattern.permute.xlu1 %v1641_v2  ;;  %318 = vperm.xlu0 %1615, %v35_v7   ;;  %v40_v31 = vld [vmem:[%s2472_s0 + $0x38] sm:$0xff]  ;;  %v731_v33 = vld [vmem:[%s2475_s3 + $0x40] sm:$0xff]  ;;  %v729_v35 = vld [vmem:[%s2475_s3 + $0x30] sm:$0xff] }
   0xc   :  { %78 = vperm.xlu1 %1618, %v35_v7   ;;  %805 = vmatprep.subr.mxu0 %v748_v12  ;;  %v730_v34 = vld [vmem:[%s2475_s3 + $0x38] sm:$0xff]  ;;  %v41_v36 = vld [vmem:[%s2472_s0 + $0x40] sm:$0xff]  ;;  %v728_v37 = vld [vmem:[%s2475_s3 + $0x28] sm:$0xff] }
   0xd   :  { %806 = vmatpush1.msra.mxu0 %v747_v13 }
   0xe   :  { %807 = vmatprep.subr.mxu0 %v746_v14 }
   0xf   :  { %322 = vperm.xlu0 %1615, %v36_v11   ;;  %808 = vmatpush1.msra.mxu0 %v745_v15 }
  0x10   :  { %83 = vperm.xlu1 %1618, %v36_v11   ;;  %809 = vmatprep.subr.mxu0 %v744_v17 }
  0x11   :  { %810 = vmatpush1.msra.mxu0 %v743_v18 }
  0x12   :  { %811 = vmatprep.subr.mxu0 %v742_v19 }
  0x13   :  { %326 = vperm.xlu0 %1615, %v37_v16   ;;  %812 = vmatpush1.msra.mxu0 %v741_v20 }
  0x14   :  { %88 = vperm.xlu1 %1618, %v37_v16   ;;  %813 = vmatprep.subr.mxu0 %v740_v22 }
  0x15   :  { %814 = vmatpush1.msra.mxu0 %v739_v23 }
  0x16   :  { %815 = vmatprep.subr.mxu0 %v738_v24 }
  0x17   :  { %330 = vperm.xlu0 %1615, %v38_v21   ;;  %816 = vmatpush1.msra.mxu0 %v737_v25 }
  0x18   :  { %93 = vperm.xlu1 %1618, %v38_v21   ;;  %817 = vmatprep.subr.mxu0 %v736_v27 }
  0x19   :  { %818 = vmatpush1.msra.mxu0 %v735_v28 }
  0x1a   :  { %819 = vmatprep.subr.mxu0 %v734_v29 }
  0x1b   :  { %334 = vperm.xlu0 %1615, %v39_v26   ;;  %820 = vmatpush1.msra.mxu0 %v733_v30 }
  0x1c   :  { %98 = vperm.xlu1 %1618, %v39_v26   ;;  %821 = vmatprep.subr.mxu0 %v732_v32 }
  0x1d   :  { %822 = vmatpush1.msra.mxu0 %v731_v33 }
  0x1f   :  { %338 = vperm.xlu0 %1615, %v40_v31  }
  0x20   :  { %103 = vperm.xlu1 %1618, %v40_v31  }
  0x21   :  { %12 = vsyncpa [#allocation3], 0  ;;  %823 = vmatprep.subr.mxu0 %v730_v34  ;;  %v727_v38 = vld [vmem:[%s2475_s3 + $0x20] sm:$0xff]  ;;  %v726_v39 = vld [vmem:[%s2475_s3 + $0x18] sm:$0xff]  ;;  %v227_v30 = vlaneseq  ;;  %vm31_vm0 = vcmask 57344   ;;  %vm1516_vm1 = vcmask 64512  }
  0x22   :  { %824 = vmatpush1.msra.mxu0 %v729_v35  ;;  %v725_v40 = vld [vmem:[%s2475_s3 + $0x10] sm:$0xff]  ;;  %v42_v41 = vld [vmem:[%s2472_s0 + $0x48] sm:$0xff]  ;;  %v723_v43 = vld [vmem:[%s2475_s3] sm:$0xff] }
  0x23   :  { %342 = vperm.xlu0 %1615, %v41_v36   ;;  %825 = vmatprep.subr.mxu0 %v728_v37  ;;  %v724_v42 = vld [vmem:[%s2475_s3 + $0x8] sm:$0xff]  ;;  %v786_v44 = vld [vmem:[%s2475_s3 + $0x1f8] sm:$0xff]  ;;  %v785_v45 = vld [vmem:[%s2475_s3 + $0x1f0] sm:$0xff]  ;;  %v228_v32 = vshrl.u32 %v227_v30, 7 }
  0x24   :  { %108 = vperm.xlu1 %1618, %v41_v36   ;;  %826 = vmatpush1.msra.mxu0 %v727_v38  ;;  %v43_v46 = vld [vmem:[%s2472_s0 + $0x50] sm:$0xff]  ;;  %v784_v47 = vld [vmem:[%s2475_s3 + $0x1e8] sm:$0xff]  ;;  %v783_v48 = vld [vmem:[%s2475_s3 + $0x1e0] sm:$0xff] }
  0x25   :  { %827 = vmatprep.subr.mxu0 %v726_v39  ;;  %v782_v49 = vld [vmem:[%s2475_s3 + $0x1d8] sm:$0xff]  ;;  %v781_v50 = vld [vmem:[%s2475_s3 + $0x1d0] sm:$0xff]  ;;  %v780_v52 = vld [vmem:[%s2475_s3 + $0x1c8] sm:$0xff]  ;;  %v1967_v34 = vsub.s32 0, %v228_v32  ;;  %v233_v35 = vsub.s32 2, %v228_v32  ;;  %v1972_v37 = vsub.s32 1, %v228_v32 }
  0x26   :  { %828 = vmatpush1.msra.mxu0 %v725_v40  ;;  %v44_v51 = vld [vmem:[%s2472_s0 + $0x58] sm:$0xff]  ;;  %v779_v53 = vld [vmem:[%s2475_s3 + $0x1c0] sm:$0xff]  ;;  %v777_v55 = vld [vmem:[%s2475_s3 + $0x1b0] sm:$0xff]  ;;  %v443_v38 = vsub.s32 3, %v228_v32 }
  0x27   :  { %346 = vperm.xlu0 %1615, %v42_v41   ;;  %829 = vmatprep.subr.mxu0 %v724_v42  ;;  %v778_v54 = vld [vmem:[%s2475_s3 + $0x1b8] sm:$0xff]  ;;  %v45_v56 = vld [vmem:[%s2472_s0 + $0x60] sm:$0xff]  ;;  %v776_v57 = vld [vmem:[%s2475_s3 + $0x1a8] sm:$0xff] }
  0x28   :  { %113 = vperm.xlu1 %1618, %v42_v41   ;;  %830 = vmatpush1.msra.mxu0 %v723_v43  ;;  %v775_v58 = vld [vmem:[%s2475_s3 + $0x1a0] sm:$0xff]  ;;  %v774_v59 = vld [vmem:[%s2475_s3 + $0x198] sm:$0xff]  ;;  %v773_v60 = vld [vmem:[%s2475_s3 + $0x190] sm:$0xff] }
  0x29   :  { %831 = vmatprep.subr.mxu0 %v786_v44  ;;  %v46_v61 = vld [vmem:[%s2472_s0 + $0x68] sm:$0xff]  ;;  %v771_v63 = vld [vmem:[%s2475_s3 + $0x180] sm:$0xff]  ;;  %v770_v0 = vld [vmem:[%s2475_s3 + $0x178] sm:$0xff] }
  0x2a   :  { %832 = vmatpush2.msra.mxu0 %v785_v45  ;;  %v772_v62 = vld [vmem:[%s2475_s3 + $0x188] sm:$0xff]  ;;  %v769_v1 = vld [vmem:[%s2475_s3 + $0x170] sm:$0xff]  ;;  %v767_v4 = vld [vmem:[%s2475_s3 + $0x160] sm:$0xff] }
  0x2b   :  { %350 = vperm.xlu0 %1615, %v43_v46   ;;  %833 = vmatprep.subr.mxu0 %v784_v47  ;;  %v47_v2 = vld [vmem:[%s2472_s0 + $0x70] sm:$0xff]  ;;  %v768_v3 = vld [vmem:[%s2475_s3 + $0x168] sm:$0xff]  ;;  %v766_v5 = vld [vmem:[%s2475_s3 + $0x158] sm:$0xff] }
  0x2c   :  { %118 = vperm.xlu1 %1618, %v43_v46   ;;  %834 = vmatpush2.msra.mxu0 %v783_v48  ;;  %v765_v6 = vld [vmem:[%s2475_s3 + $0x150] sm:$0xff]  ;;  %v48_v7 = vld [vmem:[%s2472_s0 + $0x78] sm:$0xff]  ;;  %v764_v8 = vld [vmem:[%s2475_s3 + $0x148] sm:$0xff] }
  0x2d   :  { %835 = vmatprep.subr.mxu0 %v782_v49  ;;  %v763_v9 = vld [vmem:[%s2475_s3 + $0x140] sm:$0xff]  ;;  %v762_v10 = vld [vmem:[%s2475_s3 + $0x138] sm:$0xff]  ;;  %v761_v11 = vld [vmem:[%s2475_s3 + $0x130] sm:$0xff] }
  0x2e   :  { %836 = vmatpush2.msra.mxu0 %v781_v50  ;;  %v49_v12 = vld [vmem:[%s2472_s0 + $0x80] sm:$0xff]  ;;  %v760_v13 = vld [vmem:[%s2475_s3 + $0x128] sm:$0xff]  ;;  %v758_v15 = vld [vmem:[%s2475_s3 + $0x118] sm:$0xff] }
  0x2f   :  { %354 = vperm.xlu0 %1615, %v44_v51   ;;  %837 = vmatprep.subr.mxu0 %v780_v52  ;;  %v759_v14 = vld [vmem:[%s2475_s3 + $0x120] sm:$0xff]  ;;  %v757_v16 = vld [vmem:[%s2475_s3 + $0x110] sm:$0xff]  ;;  %v50_v17 = vld [vmem:[%s2472_s0 + $0x88] sm:$0xff] }
  0x30   :  { %123 = vperm.xlu1 %1618, %v44_v51   ;;  %838 = vmatpush2.msra.mxu0 %v779_v53  ;;  %v756_v18 = vld [vmem:[%s2475_s3 + $0x108] sm:$0xff]  ;;  %v755_v19 = vld [vmem:[%s2475_s3 + $0x100] sm:$0xff]  ;;  %v51_v20 = vld [vmem:[%s2472_s0 + $0x90] sm:$0xff] }
  0x31   :  { %839 = vmatprep.subr.mxu0 %v778_v54  ;;  %v52_v21 = vld [vmem:[%s2472_s0 + $0x98] sm:$0xff]  ;;  %v53_v22 = vld [vmem:[%s2472_s0 + $0xa0] sm:$0xff]  ;;  %v54_v23 = vld [vmem:[%s2472_s0 + $0xa8] sm:$0xff] }
  0x32   :  { %840 = vmatpush2.msra.mxu0 %v777_v55  ;;  %v55_v24 = vld [vmem:[%s2472_s0 + $0xb0] sm:$0xff]  ;;  %v56_v25 = vld [vmem:[%s2472_s0 + $0xb8] sm:$0xff]  ;;  %v57_v26 = vld [vmem:[%s2472_s0 + $0xc0] sm:$0xff] }
  0x33   :  { %358 = vperm.xlu0 %1615, %v45_v56   ;;  %841 = vmatprep.subr.mxu0 %v776_v57  ;;  %v58_v27 = vld [vmem:[%s2472_s0 + $0xc8] sm:$0xff]  ;;  %v59_v28 = vld [vmem:[%s2472_s0 + $0xd0] sm:$0xff]  ;;  %v60_v29 = vld [vmem:[%s2472_s0 + $0xd8] sm:$0xff] }
  0x34   :  { %128 = vperm.xlu1 %1618, %v45_v56   ;;  %842 = vmatpush2.msra.mxu0 %v775_v58  ;;  %v61_v31 = vld [vmem:[%s2472_s0 + $0xe0] sm:$0xff]  ;;  %v62_v33 = vld [vmem:[%s2472_s0 + $0xe8] sm:$0xff]  ;;  %v63_v39 = vld [vmem:[%s2472_s0 + $0xf0] sm:$0xff] }
  0x35   :  { %843 = vmatprep.subr.mxu0 %v774_v59  ;;  %v65_v36 = vld [vmem:[%s2473_s1] sm:$0xf]  ;;  %v64_v44 = vld [vmem:[%s2472_s0 + $0xf8] sm:$0xff] }
  0x36   :  { %844 = vmatpush2.msra.mxu0 %v773_v60  ;;  %v230_v40 = vrot.slane %v65_v36, %v1967_v34  ;;  %v234_v41 = vrot.slane %v65_v36, %v233_v35  ;;  %v440_v42 = vrot.slane %v65_v36, %v1972_v37  ;;  %v444_v43 = vrot.slane %v65_v36, %v443_v38  ;;  %v583_v49 = vld [vmem:[%s2474_s2] sm:$0x3]  ;;  %v1133_v36 = vld [vmem:[%s2477_s5 + $0x68] sm:$0xff] }
  0x37   :  { %362 = vperm.xlu0 %1615, %v46_v61   ;;  %845 = vmatprep.subr.mxu0 %v772_v62  ;;  %v1998_v52 = vrot.slane %v583_v49, %v1967_v34  ;;  %v2001_v53 = vrot.slane %v583_v49, %v1972_v37 }
  0x38   :  { %133 = vperm.xlu1 %1618, %v46_v61   ;;  %846 = vmatpush2.msra.mxu0 %v771_v63  ;;  %v1983_v47 = vrot.slane %v230_v40, %v1967_v34  ;;  %v1986_v48 = vrot.slane %v234_v41, %v1967_v34  ;;  %v1992_v50 = vrot.slane %v440_v42, %v1972_v37 }
  0x39   :  { %847 = vmatprep.subr.mxu0 %v770_v0  ;;  %v1995_v51 = vrot.slane %v444_v43, %v1972_v37 }
  0x3a   :  { %848 = vmatpush2.msra.mxu0 %v769_v1 }
  0x3b   :  { %366 = vperm.xlu0 %1615, %v47_v2   ;;  %849 = vmatprep.subr.mxu0 %v768_v3 }
  0x3c   :  { %138 = vperm.xlu1 %1618, %v47_v2   ;;  %850 = vmatpush2.msra.mxu0 %v767_v4 }
  0x3d   :  { %851 = vmatprep.subr.mxu0 %v766_v5 }
  0x3e   :  { %852 = vmatpush2.msra.mxu0 %v765_v6 }
  0x3f   :  { %370 = vperm.xlu0 %1615, %v48_v7   ;;  %853 = vmatprep.subr.mxu0 %v764_v8 }
  0x40   :  { %143 = vperm.xlu1 %1618, %v48_v7   ;;  %854 = vmatpush2.msra.mxu0 %v763_v9 }
  0x41   :  { %855 = vmatprep.subr.mxu0 %v762_v10 }
  0x42   :  { %856 = vmatpush2.msra.mxu0 %v761_v11 }
  0x43   :  { %374 = vperm.xlu0 %1615, %v49_v12   ;;  %857 = vmatprep.subr.mxu0 %v760_v13  ;;  %v1135_v13 = vld [vmem:[%s2477_s5 + $0x78] sm:$0xff] }
  0x44   :  { %148 = vperm.xlu1 %1618, %v49_v12   ;;  %858 = vmatpush2.msra.mxu0 %v759_v14 }
  0x45   :  { %859 = vmatprep.subr.mxu0 %v758_v15 }
  0x46   :  { %860 = vmatpush2.msra.mxu0 %v757_v16 }
  0x47   :  { %378 = vperm.xlu0 %1615, %v50_v17   ;;  %861 = vmatprep.subr.mxu0 %v756_v18 }
  0x48   :  { %153 = vperm.xlu1 %1618, %v50_v17   ;;  %862 = vmatpush2.msra.mxu0 %v755_v19 }
  0x4b   :  { %382 = vperm.xlu0 %1615, %v51_v20  }
  0x4c   :  { %158 = vperm.xlu1 %1618, %v51_v20   ;;  %v1643_v20 = vmov 0.0  }
  0x4d   :  { %1159 = vmatprep.subr.mxu1 %v1643_v20  ;;  %32 = vst.msk [vmem:[#allocation2] sm:$0x1] %vm31_vm0, %v1643_v20 }
  0x4e   :  { %1160 = vmatpush1.msra.mxu1 %v1135_v13  ;;  %v1129_v13 = vld [vmem:[%s2477_s5 + $0x48] sm:$0xff] }
  0x4f   :  { %386 = vperm.xlu0 %1615, %v52_v21   ;;  %1161 = vmatprep.subr.mxu1 %v1643_v20 }
  0x50   :  { %163 = vperm.xlu1 %1618, %v52_v21  }
  0x53   :  { %390 = vperm.xlu0 %1615, %v53_v22  }
  0x54   :  { %168 = vperm.xlu1 %1618, %v53_v22  }
  0x57   :  { %394 = vperm.xlu0 %1615, %v54_v23  }
  0x58   :  { %173 = vperm.xlu1 %1618, %v54_v23  }
  0x5b   :  { %398 = vperm.xlu0 %1615, %v55_v24  }
  0x5c   :  { %178 = vperm.xlu1 %1618, %v55_v24  }
  0x5f   :  { %402 = vperm.xlu0 %1615, %v56_v25  }
  0x60   :  { %183 = vperm.xlu1 %1618, %v56_v25   ;;  %v1134_v25 = vld [vmem:[%s2477_s5 + $0x70] sm:$0xff] }
  0x61   :  { %1162 = vmatpush1.msra.mxu1 %v1134_v25 }
  0x62   :  { %1163 = vmatprep.subr.mxu1 %v1643_v20 }
  0x63   :  { %406 = vperm.xlu0 %1615, %v57_v26   ;;  %1164 = vmatpush1.msra.mxu1 %v1133_v36 }
  0x64   :  { %188 = vperm.xlu1 %1618, %v57_v26   ;;  %1165 = vmatprep.subr.mxu1 %v1643_v20 }
  0x67   :  { %410 = vperm.xlu0 %1615, %v58_v27  }
  0x68   :  { %193 = vperm.xlu1 %1618, %v58_v27  }
  0x6b   :  { %414 = vperm.xlu0 %1615, %v59_v28  }
  0x6c   :  { %198 = vperm.xlu1 %1618, %v59_v28  }
  0x6f   :  { %418 = vperm.xlu0 %1615, %v60_v29  }
  0x70   :  { %203 = vperm.xlu1 %1618, %v60_v29  }
  0x73   :  { %422 = vperm.xlu0 %1615, %v61_v31  }
  0x74   :  { %208 = vperm.xlu1 %1618, %v61_v31  }
  0x77   :  { %426 = vperm.xlu0 %1615, %v62_v33  }
  0x78   :  { %213 = vperm.xlu1 %1618, %v62_v33  }
  0x7b   :  { %430 = vperm.xlu0 %1615, %v63_v39  }
  0x7c   :  { %218 = vperm.xlu1 %1618, %v63_v39  }
  0x7d   :  { %v69_v45 = vpop.permute.xlu0 %68  ;;  %v74_v46 = vpop.permute.xlu1 %73 }
  0x7e   :  { %v245_v54 = vmul.f32 %v1983_v47, %v69_v45  ;;  %v246_v55 = vmul.f32 %v1986_v48, %v69_v45  ;;  %v247_v56 = vmul.f32 %v1983_v47, %v74_v46  ;;  %v248_v57 = vmul.f32 %v1986_v48, %v74_v46 }
  0x7f   :  { %434 = vperm.xlu0 %1615, %v64_v44  }
  0x80   :  { %223 = vperm.xlu1 %1618, %v64_v44   ;;  %v1132_v44 = vld [vmem:[%s2477_s5 + $0x60] sm:$0xff] }
  0x81   :  { %1166 = vmatpush1.msra.mxu1 %v1132_v44 }
  0x82   :  { %v315_v58 = vpop.permute.xlu1 %314  ;;  %v311_v59 = vpop.permute.xlu0 %310  ;;  %1167 = vmatprep.subr.mxu1 %v1643_v20 }
  0x83   :  { %v457_v60 = vmul.f32 %v1992_v50, %v315_v58  ;;  %v458_v61 = vmul.f32 %v1995_v51, %v315_v58  ;;  %v455_v62 = vmul.f32 %v1992_v50, %v311_v59  ;;  %v456_v63 = vmul.f32 %v1995_v51, %v311_v59 }
  0x85   :  { %v521_v0 = vadd.f32 %v457_v60, %v247_v56  ;;  %v522_v1 = vadd.f32 %v458_v61, %v248_v57  ;;  %v519_v2 = vadd.f32 %v455_v62, %v245_v54  ;;  %v520_v3 = vadd.f32 %v456_v63, %v246_v55  ;;  %v1131_v60 = vld [vmem:[%s2477_s5 + $0x58] sm:$0xff] }
  0x86   :  { %v319_v4 = vpop.permute.xlu0 %318  ;;  %1168 = vmatpush1.msra.mxu1 %v1131_v60 }
  0x87   :  { %v459_v5 = vmul.f32 %v1992_v50, %v319_v4  ;;  %v460_v6 = vmul.f32 %v1995_v51, %v319_v4  ;;  %v79_v7 = vpop.permute.xlu1 %78  ;;  %v596_v8 = vadd.f32 %v2001_v53, %v520_v3  ;;  %v595_v9 = vadd.f32 %v1998_v52, %v519_v2  ;;  %1169 = vmatprep.subr.mxu1 %v1643_v20 }
  0x88   :  { %v249_v10 = vmul.f32 %v1983_v47, %v79_v7  ;;  %v250_v11 = vmul.f32 %v1986_v48, %v79_v7  ;;  %v598_v12 = vadd.f32 %v2001_v53, %v522_v1  ;;  %v597_v16 = vadd.f32 %v1998_v52, %v521_v0 }
  0x89   :  { %v660_v14 = vmax.f32 %v596_v8, 0.0  ;;  %v659_v15 = vmax.f32 %v595_v9, 0.0 }
  0x8a   :  { %v523_v17 = vadd.f32 %v459_v5, %v249_v10  ;;  %v524_v18 = vadd.f32 %v460_v6, %v250_v11  ;;  %v323_v19 = vpop.permute.xlu0 %322  ;;  %v662_v24 = vmax.f32 %v598_v12, 0.0  ;;  %v661_v29 = vmax.f32 %v597_v16, 0.0  ;;  %v1130_v6 = vld [vmem:[%s2477_s5 + $0x50] sm:$0xff] }
  0x8b   :  { %v461_v21 = vmul.f32 %v1992_v50, %v323_v19  ;;  %v462_v22 = vmul.f32 %v1995_v51, %v323_v19  ;;  %v84_v23 = vpop.permute.xlu1 %83  ;;  %863 = vmatprep.mubr.f32.mxu0 %v660_v14  ;;  %1170 = vmatpush1.msra.mxu1 %v1130_v6 }
  0x8c   :  { %v251_v26 = vmul.f32 %v1983_v47, %v84_v23  ;;  %v252_v27 = vmul.f32 %v1986_v48, %v84_v23  ;;  %864 = vmatmul.mubr.f32.vlgmr.msra.gmra.mxu0 %v659_v15  ;;  %v600_v28 = vadd.f32 %v2001_v53, %v524_v18  ;;  %v599_v35 = vadd.f32 %v1998_v52, %v523_v17 }
  0x8d   :  { %869 = vmatprep.mubr.f32.mxu0 %v662_v24  ;;  %1171 = vmatprep.subr.mxu1 %v1643_v20  ;;  %v1128_v24 = vld [vmem:[%s2477_s5 + $0x40] sm:$0xff] }
  0x8e   :  { %v525_v30 = vadd.f32 %v461_v21, %v251_v26  ;;  %v526_v31 = vadd.f32 %v462_v22, %v252_v27  ;;  %v327_v32 = vpop.permute.xlu0 %326  ;;  %v664_v33 = vmax.f32 %v600_v28, 0.0  ;;  %v663_v55 = vmax.f32 %v599_v35, 0.0  ;;  %1172 = vmatpush1.msra.mxu1 %v1129_v13  ;;  %v1127_v35 = vld [vmem:[%s2477_s5 + $0x38] sm:$0xff] }
  0x8f   :  { %v463_v38 = vmul.f32 %v1992_v50, %v327_v32  ;;  %v464_v39 = vmul.f32 %v1995_v51, %v327_v32  ;;  %v89_v40 = vpop.permute.xlu1 %88  ;;  %1173 = vmatprep.subr.mxu1 %v1643_v20 }
  0x90   :  { %v253_v41 = vmul.f32 %v1983_v47, %v89_v40  ;;  %v254_v42 = vmul.f32 %v1986_v48, %v89_v40  ;;  %870 = vmatmul.mubr.f32.gmra.mxu0 %v661_v29  ;;  %v602_v43 = vadd.f32 %v2001_v53, %v526_v31  ;;  %v601_v45 = vadd.f32 %v1998_v52, %v525_v30 }
  0x91   :  { %875 = vmatprep.mubr.f32.mxu0 %v664_v33  ;;  %1174 = vmatpush1.msra.mxu1 %v1128_v24 }
  0x92   :  { %v527_v46 = vadd.f32 %v463_v38, %v253_v41  ;;  %v528_v49 = vadd.f32 %v464_v39, %v254_v42  ;;  %v331_v54 = vpop.permute.xlu0 %330  ;;  %v666_v56 = vmax.f32 %v602_v43, 0.0  ;;  %v665_v0 = vmax.f32 %v601_v45, 0.0  ;;  %1175 = vmatprep.subr.mxu1 %v1643_v20  ;;  %v1126_v43 = vld [vmem:[%s2477_s5 + $0x30] sm:$0xff] }
  0x93   :  { %v465_v57 = vmul.f32 %v1992_v50, %v331_v54  ;;  %v466_v58 = vmul.f32 %v1995_v51, %v331_v54  ;;  %v94_v59 = vpop.permute.xlu1 %93  ;;  %1176 = vmatpush1.msra.mxu1 %v1127_v35 }
  0x94   :  { %v255_v61 = vmul.f32 %v1983_v47, %v94_v59  ;;  %v256_v62 = vmul.f32 %v1986_v48, %v94_v59  ;;  %876 = vmatmul.mubr.f32.gmra.mxu0 %v663_v55  ;;  %v604_v63 = vadd.f32 %v2001_v53, %v528_v49  ;;  %v603_v5 = vadd.f32 %v1998_v52, %v527_v46  ;;  %v1125_v59 = vld [vmem:[%s2477_s5 + $0x28] sm:$0xff] }
  0x95   :  { %881 = vmatprep.mubr.f32.mxu0 %v666_v56  ;;  %1177 = vmatprep.subr.mxu1 %v1643_v20 }
  0x96   :  { %v529_v1 = vadd.f32 %v465_v57, %v255_v61  ;;  %v530_v2 = vadd.f32 %v466_v58, %v256_v62  ;;  %v335_v3 = vpop.permute.xlu0 %334  ;;  %v668_v4 = vmax.f32 %v604_v63, 0.0  ;;  %v667_v18 = vmax.f32 %v603_v5, 0.0  ;;  %1178 = vmatpush1.msra.mxu1 %v1126_v43  ;;  %v1124_v5 = vld [vmem:[%s2477_s5 + $0x20] sm:$0xff] }
  0x97   :  { %v467_v7 = vmul.f32 %v1992_v50, %v335_v3  ;;  %v468_v8 = vmul.f32 %v1995_v51, %v335_v3  ;;  %v99_v9 = vpop.permute.xlu1 %98  ;;  %1179 = vmatprep.subr.mxu1 %v1643_v20 }
  0x98   :  { %v257_v10 = vmul.f32 %v1983_v47, %v99_v9  ;;  %v258_v11 = vmul.f32 %v1986_v48, %v99_v9  ;;  %882 = vmatmul.mubr.f32.gmra.mxu0 %v665_v0  ;;  %v606_v12 = vadd.f32 %v2001_v53, %v530_v2  ;;  %v605_v14 = vadd.f32 %v1998_v52, %v529_v1 }
  0x99   :  { %887 = vmatprep.mubr.f32.mxu0 %v668_v4  ;;  %1180 = vmatpush1.msra.mxu1 %v1125_v59 }
  0x9a   :  { %v531_v15 = vadd.f32 %v467_v7, %v257_v10  ;;  %v532_v16 = vadd.f32 %v468_v8, %v258_v11  ;;  %v339_v17 = vpop.permute.xlu0 %338  ;;  %v670_v19 = vmax.f32 %v606_v12, 0.0  ;;  %v669_v28 = vmax.f32 %v605_v14, 0.0  ;;  %1181 = vmatprep.subr.mxu1 %v1643_v20  ;;  %v1123_v12 = vld [vmem:[%s2477_s5 + $0x18] sm:$0xff] }
  0x9b   :  { %v469_v21 = vmul.f32 %v1992_v50, %v339_v17  ;;  %v470_v22 = vmul.f32 %v1995_v51, %v339_v17  ;;  %v104_v23 = vpop.permute.xlu1 %103  ;;  %1182 = vmatpush1.msra.mxu1 %v1124_v5 }
  0x9c   :  { %v259_v25 = vmul.f32 %v1983_v47, %v104_v23  ;;  %v260_v26 = vmul.f32 %v1986_v48, %v104_v23  ;;  %888 = vmatmul.mubr.f32.gmra.mxu0 %v667_v18  ;;  %v608_v27 = vadd.f32 %v2001_v53, %v532_v16  ;;  %v607_v33 = vadd.f32 %v1998_v52, %v531_v15  ;;  %v1122_v23 = vld [vmem:[%s2477_s5 + $0x10] sm:$0xff] }
  0x9d   :  { %893 = vmatprep.mubr.f32.mxu0 %v670_v19  ;;  %1183 = vmatprep.subr.mxu1 %v1643_v20 }
  0x9e   :  { %v533_v29 = vadd.f32 %v469_v21, %v259_v25  ;;  %v534_v30 = vadd.f32 %v470_v22, %v260_v26  ;;  %v343_v31 = vpop.permute.xlu0 %342  ;;  %v672_v32 = vmax.f32 %v608_v27, 0.0  ;;  %v671_v54 = vmax.f32 %v607_v33, 0.0  ;;  %1184 = vmatpush1.msra.mxu1 %v1123_v12  ;;  %v1121_v33 = vld [vmem:[%s2477_s5 + $0x8] sm:$0xff] }
  0x9f   :  { %v471_v36 = vmul.f32 %v1992_v50, %v343_v31  ;;  %v472_v38 = vmul.f32 %v1995_v51, %v343_v31  ;;  %v109_v39 = vpop.permute.xlu1 %108  ;;  %1185 = vmatprep.subr.mxu1 %v1643_v20 }
  0xa0   :  { %v261_v40 = vmul.f32 %v1983_v47, %v109_v39  ;;  %v262_v41 = vmul.f32 %v1986_v48, %v109_v39  ;;  %894 = vmatmul.mubr.f32.gmra.mxu0 %v669_v28  ;;  %v610_v42 = vadd.f32 %v2001_v53, %v534_v30  ;;  %v609_v44 = vadd.f32 %v1998_v52, %v533_v29 }
  0xa1   :  { %899 = vmatprep.mubr.f32.mxu0 %v672_v32  ;;  %1186 = vmatpush1.msra.mxu1 %v1122_v23 }
  0xa2   :  { %v535_v45 = vadd.f32 %v471_v36, %v261_v40  ;;  %v536_v46 = vadd.f32 %v472_v38, %v262_v41  ;;  %v347_v49 = vpop.permute.xlu0 %346  ;;  %v674_v55 = vmax.f32 %v610_v42, 0.0  ;;  %v673_v63 = vmax.f32 %v609_v44, 0.0  ;;  %1187 = vmatprep.subr.mxu1 %v1643_v20  ;;  %v1120_v42 = vld [vmem:[%s2477_s5] sm:$0xff] }
  0xa3   :  { %v473_v56 = vmul.f32 %v1992_v50, %v347_v49  ;;  %v474_v57 = vmul.f32 %v1995_v51, %v347_v49  ;;  %v114_v58 = vpop.permute.xlu1 %113  ;;  %1188 = vmatpush1.msra.mxu1 %v1121_v33 }
  0xa4   :  { %v263_v60 = vmul.f32 %v1983_v47, %v114_v58  ;;  %v264_v61 = vmul.f32 %v1986_v48, %v114_v58  ;;  %900 = vmatmul.mubr.f32.gmra.mxu0 %v671_v54  ;;  %v612_v62 = vadd.f32 %v2001_v53, %v536_v46  ;;  %v611_v4 = vadd.f32 %v1998_v52, %v535_v45  ;;  %v1151_v58 = vld [vmem:[%s2477_s5 + $0xf8] sm:$0xff] }
  0xa5   :  { %905 = vmatprep.mubr.f32.mxu0 %v674_v55  ;;  %1189 = vmatprep.subr.mxu1 %v1643_v20 }
  0xa6   :  { %v537_v0 = vadd.f32 %v473_v56, %v263_v60  ;;  %v538_v1 = vadd.f32 %v474_v57, %v264_v61  ;;  %v351_v2 = vpop.permute.xlu0 %350  ;;  %v676_v3 = vmax.f32 %v612_v62, 0.0  ;;  %v675_v17 = vmax.f32 %v611_v4, 0.0  ;;  %1190 = vmatpush1.msra.mxu1 %v1120_v42  ;;  %v1150_v4 = vld [vmem:[%s2477_s5 + $0xf0] sm:$0xff] }
  0xa7   :  { %v475_v6 = vmul.f32 %v1992_v50, %v351_v2  ;;  %v476_v7 = vmul.f32 %v1995_v51, %v351_v2  ;;  %v119_v8 = vpop.permute.xlu1 %118  ;;  %1191 = vmatprep.subr.mxu1 %v1643_v20 }
  0xa8   :  { %v265_v9 = vmul.f32 %v1983_v47, %v119_v8  ;;  %v266_v10 = vmul.f32 %v1986_v48, %v119_v8  ;;  %906 = vmatmul.mubr.f32.gmra.mxu0 %v673_v63  ;;  %v614_v11 = vadd.f32 %v2001_v53, %v538_v1  ;;  %v613_v13 = vadd.f32 %v1998_v52, %v537_v0 }
  0xa9   :  { %911 = vmatprep.mubr.f32.mxu0 %v676_v3  ;;  %1192 = vmatpush2.msra.mxu1 %v1151_v58 }
  0xaa   :  { %v539_v14 = vadd.f32 %v475_v6, %v265_v9  ;;  %v540_v15 = vadd.f32 %v476_v7, %v266_v10  ;;  %v355_v16 = vpop.permute.xlu0 %354  ;;  %v678_v18 = vmax.f32 %v614_v11, 0.0  ;;  %v677_v27 = vmax.f32 %v613_v13, 0.0  ;;  %1193 = vmatprep.subr.mxu1 %v1643_v20  ;;  %v1149_v11 = vld [vmem:[%s2477_s5 + $0xe8] sm:$0xff] }
  0xab   :  { %v477_v19 = vmul.f32 %v1992_v50, %v355_v16  ;;  %v478_v21 = vmul.f32 %v1995_v51, %v355_v16  ;;  %v124_v22 = vpop.permute.xlu1 %123  ;;  %1194 = vmatpush2.msra.mxu1 %v1150_v4 }
  0xac   :  { %v267_v24 = vmul.f32 %v1983_v47, %v124_v22  ;;  %v268_v25 = vmul.f32 %v1986_v48, %v124_v22  ;;  %912 = vmatmul.mubr.f32.gmra.mxu0 %v675_v17  ;;  %v616_v26 = vadd.f32 %v2001_v53, %v540_v15  ;;  %v615_v32 = vadd.f32 %v1998_v52, %v539_v14  ;;  %v1148_v22 = vld [vmem:[%s2477_s5 + $0xe0] sm:$0xff] }
  0xad   :  { %917 = vmatprep.mubr.f32.mxu0 %v678_v18  ;;  %1195 = vmatprep.subr.mxu1 %v1643_v20 }
  0xae   :  { %v541_v28 = vadd.f32 %v477_v19, %v267_v24  ;;  %v542_v29 = vadd.f32 %v478_v21, %v268_v25  ;;  %v359_v30 = vpop.permute.xlu0 %358  ;;  %v680_v31 = vmax.f32 %v616_v26, 0.0  ;;  %v679_v49 = vmax.f32 %v615_v32, 0.0  ;;  %1196 = vmatpush2.msra.mxu1 %v1149_v11  ;;  %v1147_v32 = vld [vmem:[%s2477_s5 + $0xd8] sm:$0xff] }
  0xaf   :  { %v479_v35 = vmul.f32 %v1992_v50, %v359_v30  ;;  %v480_v36 = vmul.f32 %v1995_v51, %v359_v30  ;;  %v129_v38 = vpop.permute.xlu1 %128  ;;  %1197 = vmatprep.subr.mxu1 %v1643_v20 }
  0xb0   :  { %v269_v39 = vmul.f32 %v1983_v47, %v129_v38  ;;  %v270_v40 = vmul.f32 %v1986_v48, %v129_v38  ;;  %918 = vmatmul.mubr.f32.gmra.mxu0 %v677_v27  ;;  %v618_v41 = vadd.f32 %v2001_v53, %v542_v29  ;;  %v617_v43 = vadd.f32 %v1998_v52, %v541_v28 }
  0xb1   :  { %923 = vmatprep.mubr.f32.mxu0 %v680_v31  ;;  %1198 = vmatpush2.msra.mxu1 %v1148_v22 }
  0xb2   :  { %v543_v44 = vadd.f32 %v479_v35, %v269_v39  ;;  %v544_v45 = vadd.f32 %v480_v36, %v270_v40  ;;  %v363_v46 = vpop.permute.xlu0 %362  ;;  %v682_v54 = vmax.f32 %v618_v41, 0.0  ;;  %v681_v62 = vmax.f32 %v617_v43, 0.0  ;;  %1199 = vmatprep.subr.mxu1 %v1643_v20  ;;  %v1146_v41 = vld [vmem:[%s2477_s5 + $0xd0] sm:$0xff] }
  0xb3   :  { %v481_v55 = vmul.f32 %v1992_v50, %v363_v46  ;;  %v482_v56 = vmul.f32 %v1995_v51, %v363_v46  ;;  %v134_v57 = vpop.permute.xlu1 %133  ;;  %1200 = vmatpush2.msra.mxu1 %v1147_v32 }
  0xb4   :  { %v271_v59 = vmul.f32 %v1983_v47, %v134_v57  ;;  %v272_v60 = vmul.f32 %v1986_v48, %v134_v57  ;;  %924 = vmatmul.mubr.f32.gmra.mxu0 %v679_v49  ;;  %v620_v61 = vadd.f32 %v2001_v53, %v544_v45  ;;  %v619_v3 = vadd.f32 %v1998_v52, %v543_v44  ;;  %v1145_v57 = vld [vmem:[%s2477_s5 + $0xc8] sm:$0xff] }
  0xb5   :  { %929 = vmatprep.mubr.f32.mxu0 %v682_v54  ;;  %1201 = vmatprep.subr.mxu1 %v1643_v20 }
  0xb6   :  { %v545_v63 = vadd.f32 %v481_v55, %v271_v59  ;;  %v546_v0 = vadd.f32 %v482_v56, %v272_v60  ;;  %v367_v1 = vpop.permute.xlu0 %366  ;;  %v684_v2 = vmax.f32 %v620_v61, 0.0  ;;  %v683_v16 = vmax.f32 %v619_v3, 0.0  ;;  %1202 = vmatpush2.msra.mxu1 %v1146_v41  ;;  %v1144_v3 = vld [vmem:[%s2477_s5 + $0xc0] sm:$0xff] }
  0xb7   :  { %v483_v5 = vmul.f32 %v1992_v50, %v367_v1  ;;  %v484_v6 = vmul.f32 %v1995_v51, %v367_v1  ;;  %v139_v7 = vpop.permute.xlu1 %138  ;;  %1203 = vmatprep.subr.mxu1 %v1643_v20 }
  0xb8   :  { %v273_v8 = vmul.f32 %v1983_v47, %v139_v7  ;;  %v274_v9 = vmul.f32 %v1986_v48, %v139_v7  ;;  %930 = vmatmul.mubr.f32.gmra.mxu0 %v681_v62  ;;  %v622_v10 = vadd.f32 %v2001_v53, %v546_v0  ;;  %v621_v12 = vadd.f32 %v1998_v52, %v545_v63 }
  0xb9   :  { %935 = vmatprep.mubr.f32.mxu0 %v684_v2  ;;  %1204 = vmatpush2.msra.mxu1 %v1145_v57 }
  0xba   :  { %v547_v13 = vadd.f32 %v483_v5, %v273_v8  ;;  %v548_v14 = vadd.f32 %v484_v6, %v274_v9  ;;  %v371_v15 = vpop.permute.xlu0 %370  ;;  %v686_v17 = vmax.f32 %v622_v10, 0.0  ;;  %v685_v26 = vmax.f32 %v621_v12, 0.0  ;;  %1205 = vmatprep.subr.mxu1 %v1643_v20  ;;  %v1143_v10 = vld [vmem:[%s2477_s5 + $0xb8] sm:$0xff] }
  0xbb   :  { %v485_v18 = vmul.f32 %v1992_v50, %v371_v15  ;;  %v486_v19 = vmul.f32 %v1995_v51, %v371_v15  ;;  %v144_v21 = vpop.permute.xlu1 %143  ;;  %1206 = vmatpush2.msra.mxu1 %v1144_v3 }
  0xbc   :  { %v275_v23 = vmul.f32 %v1983_v47, %v144_v21  ;;  %v276_v24 = vmul.f32 %v1986_v48, %v144_v21  ;;  %936 = vmatmul.mubr.f32.gmra.mxu0 %v683_v16  ;;  %v624_v25 = vadd.f32 %v2001_v53, %v548_v14  ;;  %v623_v31 = vadd.f32 %v1998_v52, %v547_v13  ;;  %v1142_v21 = vld [vmem:[%s2477_s5 + $0xb0] sm:$0xff] }
  0xbd   :  { %941 = vmatprep.mubr.f32.mxu0 %v686_v17  ;;  %1207 = vmatprep.subr.mxu1 %v1643_v20 }
  0xbe   :  { %v549_v27 = vadd.f32 %v485_v18, %v275_v23  ;;  %v550_v28 = vadd.f32 %v486_v19, %v276_v24  ;;  %v375_v29 = vpop.permute.xlu0 %374  ;;  %v688_v30 = vmax.f32 %v624_v25, 0.0  ;;  %v687_v46 = vmax.f32 %v623_v31, 0.0  ;;  %1208 = vmatpush2.msra.mxu1 %v1143_v10  ;;  %v1141_v31 = vld [vmem:[%s2477_s5 + $0xa8] sm:$0xff] }
  0xbf   :  { %v487_v33 = vmul.f32 %v1992_v50, %v375_v29  ;;  %v488_v35 = vmul.f32 %v1995_v51, %v375_v29  ;;  %v149_v36 = vpop.permute.xlu1 %148  ;;  %1209 = vmatprep.subr.mxu1 %v1643_v20 }
  0xc0   :  { %v277_v38 = vmul.f32 %v1983_v47, %v149_v36  ;;  %v278_v39 = vmul.f32 %v1986_v48, %v149_v36  ;;  %942 = vmatmul.mubr.f32.gmra.mxu0 %v685_v26  ;;  %v626_v40 = vadd.f32 %v2001_v53, %v550_v28  ;;  %v625_v42 = vadd.f32 %v1998_v52, %v549_v27 }
  0xc1   :  { %947 = vmatprep.mubr.f32.mxu0 %v688_v30  ;;  %1210 = vmatpush2.msra.mxu1 %v1142_v21 }
  0xc2   :  { %v551_v43 = vadd.f32 %v487_v33, %v277_v38  ;;  %v552_v44 = vadd.f32 %v488_v35, %v278_v39  ;;  %v379_v45 = vpop.permute.xlu0 %378  ;;  %v690_v49 = vmax.f32 %v626_v40, 0.0  ;;  %v689_v61 = vmax.f32 %v625_v42, 0.0  ;;  %1211 = vmatprep.subr.mxu1 %v1643_v20  ;;  %v1140_v40 = vld [vmem:[%s2477_s5 + $0xa0] sm:$0xff] }
  0xc3   :  { %v489_v54 = vmul.f32 %v1992_v50, %v379_v45  ;;  %v490_v55 = vmul.f32 %v1995_v51, %v379_v45  ;;  %v154_v56 = vpop.permute.xlu1 %153  ;;  %1212 = vmatpush2.msra.mxu1 %v1141_v31 }
  0xc4   :  { %v279_v58 = vmul.f32 %v1983_v47, %v154_v56  ;;  %v280_v59 = vmul.f32 %v1986_v48, %v154_v56  ;;  %948 = vmatmul.mubr.f32.gmra.mxu0 %v687_v46  ;;  %v628_v60 = vadd.f32 %v2001_v53, %v552_v44  ;;  %v627_v2 = vadd.f32 %v1998_v52, %v551_v43  ;;  %v1139_v56 = vld [vmem:[%s2477_s5 + $0x98] sm:$0xff] }
  0xc5   :  { %953 = vmatprep.mubr.f32.mxu0 %v690_v49  ;;  %1213 = vmatprep.subr.mxu1 %v1643_v20 }
  0xc6   :  { %v553_v62 = vadd.f32 %v489_v54, %v279_v58  ;;  %v554_v63 = vadd.f32 %v490_v55, %v280_v59  ;;  %v383_v0 = vpop.permute.xlu0 %382  ;;  %v692_v1 = vmax.f32 %v628_v60, 0.0  ;;  %v691_v15 = vmax.f32 %v627_v2, 0.0  ;;  %1214 = vmatpush2.msra.mxu1 %v1140_v40  ;;  %v1138_v2 = vld [vmem:[%s2477_s5 + $0x90] sm:$0xff] }
  0xc7   :  { %v491_v4 = vmul.f32 %v1992_v50, %v383_v0  ;;  %v492_v5 = vmul.f32 %v1995_v51, %v383_v0  ;;  %v159_v6 = vpop.permute.xlu1 %158  ;;  %1215 = vmatprep.subr.mxu1 %v1643_v20 }
  0xc8   :  { %v281_v7 = vmul.f32 %v1983_v47, %v159_v6  ;;  %v282_v8 = vmul.f32 %v1986_v48, %v159_v6  ;;  %954 = vmatmul.mubr.f32.gmra.mxu0 %v689_v61  ;;  %v630_v9 = vadd.f32 %v2001_v53, %v554_v63  ;;  %v629_v11 = vadd.f32 %v1998_v52, %v553_v62 }
  0xc9   :  { %959 = vmatprep.mubr.f32.mxu0 %v692_v1  ;;  %1216 = vmatpush2.msra.mxu1 %v1139_v56 }
  0xca   :  { %v555_v12 = vadd.f32 %v491_v4, %v281_v7  ;;  %v556_v13 = vadd.f32 %v492_v5, %v282_v8  ;;  %v387_v14 = vpop.permute.xlu0 %386  ;;  %v694_v16 = vmax.f32 %v630_v9, 0.0  ;;  %v693_v25 = vmax.f32 %v629_v11, 0.0  ;;  %1217 = vmatprep.subr.mxu1 %v1643_v20  ;;  %v1137_v9 = vld [vmem:[%s2477_s5 + $0x88] sm:$0xff] }
  0xcb   :  { %v493_v17 = vmul.f32 %v1992_v50, %v387_v14  ;;  %v494_v18 = vmul.f32 %v1995_v51, %v387_v14  ;;  %v164_v19 = vpop.permute.xlu1 %163  ;;  %1218 = vmatpush2.msra.mxu1 %v1138_v2 }
  0xcc   :  { %v283_v22 = vmul.f32 %v1983_v47, %v164_v19  ;;  %v284_v23 = vmul.f32 %v1986_v48, %v164_v19  ;;  %960 = vmatmul.mubr.f32.gmra.mxu0 %v691_v15  ;;  %v632_v24 = vadd.f32 %v2001_v53, %v556_v13  ;;  %v631_v30 = vadd.f32 %v1998_v52, %v555_v12  ;;  %v1136_v19 = vld [vmem:[%s2477_s5 + $0x80] sm:$0xff] }
  0xcd   :  { %965 = vmatprep.mubr.f32.mxu0 %v694_v16  ;;  %1219 = vmatprep.subr.mxu1 %v1643_v20 }
  0xce   :  { %v557_v26 = vadd.f32 %v493_v17, %v283_v22  ;;  %v558_v27 = vadd.f32 %v494_v18, %v284_v23  ;;  %v391_v28 = vpop.permute.xlu0 %390  ;;  %v696_v29 = vmax.f32 %v632_v24, 0.0  ;;  %v695_v45 = vmax.f32 %v631_v30, 0.0  ;;  %1220 = vmatpush2.msra.mxu1 %v1137_v9 }
  0xcf   :  { %v495_v32 = vmul.f32 %v1992_v50, %v391_v28  ;;  %v496_v33 = vmul.f32 %v1995_v51, %v391_v28  ;;  %v169_v35 = vpop.permute.xlu1 %168  ;;  %1221 = vmatprep.subr.mxu1 %v1643_v20 }
  0xd0   :  { %v285_v36 = vmul.f32 %v1983_v47, %v169_v35  ;;  %v286_v38 = vmul.f32 %v1986_v48, %v169_v35  ;;  %966 = vmatmul.mubr.f32.gmra.mxu0 %v693_v25  ;;  %v634_v39 = vadd.f32 %v2001_v53, %v558_v27  ;;  %v633_v41 = vadd.f32 %v1998_v52, %v557_v26 }
  0xd1   :  { %971 = vmatprep.mubr.f32.mxu0 %v696_v29  ;;  %1222 = vmatpush2.msra.mxu1 %v1136_v19 }
  0xd2   :  { %v559_v42 = vadd.f32 %v495_v32, %v285_v36  ;;  %v560_v43 = vadd.f32 %v496_v33, %v286_v38  ;;  %v395_v44 = vpop.permute.xlu0 %394  ;;  %v698_v46 = vmax.f32 %v634_v39, 0.0  ;;  %v697_v60 = vmax.f32 %v633_v41, 0.0 }
  0xd3   :  { %v497_v49 = vmul.f32 %v1992_v50, %v395_v44  ;;  %v498_v54 = vmul.f32 %v1995_v51, %v395_v44  ;;  %v174_v55 = vpop.permute.xlu1 %173 }
  0xd4   :  { %v287_v57 = vmul.f32 %v1983_v47, %v174_v55  ;;  %v288_v58 = vmul.f32 %v1986_v48, %v174_v55  ;;  %972 = vmatmul.mubr.f32.gmra.mxu0 %v695_v45  ;;  %v636_v59 = vadd.f32 %v2001_v53, %v560_v43  ;;  %v635_v1 = vadd.f32 %v1998_v52, %v559_v42 }
  0xd5   :  { %977 = vmatprep.mubr.f32.mxu0 %v698_v46 }
  0xd6   :  { %v561_v61 = vadd.f32 %v497_v49, %v287_v57  ;;  %v562_v62 = vadd.f32 %v498_v54, %v288_v58  ;;  %v399_v63 = vpop.permute.xlu0 %398  ;;  %v700_v0 = vmax.f32 %v636_v59, 0.0  ;;  %v699_v14 = vmax.f32 %v635_v1, 0.0 }
  0xd7   :  { %v499_v3 = vmul.f32 %v1992_v50, %v399_v63  ;;  %v500_v4 = vmul.f32 %v1995_v51, %v399_v63  ;;  %v179_v5 = vpop.permute.xlu1 %178 }
  0xd8   :  { %v289_v6 = vmul.f32 %v1983_v47, %v179_v5  ;;  %v290_v7 = vmul.f32 %v1986_v48, %v179_v5  ;;  %978 = vmatmul.mubr.f32.gmra.mxu0 %v697_v60  ;;  %v638_v8 = vadd.f32 %v2001_v53, %v562_v62  ;;  %v637_v10 = vadd.f32 %v1998_v52, %v561_v61 }
  0xd9   :  { %983 = vmatprep.mubr.f32.mxu0 %v700_v0 }
  0xda   :  { %v563_v11 = vadd.f32 %v499_v3, %v289_v6  ;;  %v564_v12 = vadd.f32 %v500_v4, %v290_v7  ;;  %v403_v13 = vpop.permute.xlu0 %402  ;;  %v702_v15 = vmax.f32 %v638_v8, 0.0  ;;  %v701_v24 = vmax.f32 %v637_v10, 0.0 }
  0xdb   :  { %v501_v16 = vmul.f32 %v1992_v50, %v403_v13  ;;  %v502_v17 = vmul.f32 %v1995_v51, %v403_v13  ;;  %v184_v18 = vpop.permute.xlu1 %183 }
  0xdc   :  { %v291_v21 = vmul.f32 %v1983_v47, %v184_v18  ;;  %v292_v22 = vmul.f32 %v1986_v48, %v184_v18  ;;  %984 = vmatmul.mubr.f32.gmra.mxu0 %v699_v14  ;;  %v640_v23 = vadd.f32 %v2001_v53, %v564_v12  ;;  %v639_v29 = vadd.f32 %v1998_v52, %v563_v11 }
  0xdd   :  { %989 = vmatprep.mubr.f32.mxu0 %v702_v15 }
  0xde   :  { %v565_v25 = vadd.f32 %v501_v16, %v291_v21  ;;  %v566_v26 = vadd.f32 %v502_v17, %v292_v22  ;;  %v407_v27 = vpop.permute.xlu0 %406  ;;  %v704_v28 = vmax.f32 %v640_v23, 0.0  ;;  %v703_v42 = vmax.f32 %v639_v29, 0.0 }
  0xdf   :  { %v503_v30 = vmul.f32 %v1992_v50, %v407_v27  ;;  %v504_v31 = vmul.f32 %v1995_v51, %v407_v27  ;;  %v189_v32 = vpop.permute.xlu1 %188 }
  0xe0   :  { %v293_v33 = vmul.f32 %v1983_v47, %v189_v32  ;;  %v294_v35 = vmul.f32 %v1986_v48, %v189_v32  ;;  %990 = vmatmul.mubr.f32.gmra.mxu0 %v701_v24  ;;  %v642_v36 = vadd.f32 %v2001_v53, %v566_v26  ;;  %v641_v38 = vadd.f32 %v1998_v52, %v565_v25 }
  0xe1   :  { %995 = vmatprep.mubr.f32.mxu0 %v704_v28 }
  0xe2   :  { %v567_v39 = vadd.f32 %v503_v30, %v293_v33  ;;  %v568_v40 = vadd.f32 %v504_v31, %v294_v35  ;;  %v411_v41 = vpop.permute.xlu0 %410  ;;  %v706_v43 = vmax.f32 %v642_v36, 0.0  ;;  %v705_v56 = vmax.f32 %v641_v38, 0.0 }
  0xe3   :  { %v505_v44 = vmul.f32 %v1992_v50, %v411_v41  ;;  %v506_v45 = vmul.f32 %v1995_v51, %v411_v41  ;;  %v194_v46 = vpop.permute.xlu1 %193 }
  0xe4   :  { %v295_v49 = vmul.f32 %v1983_v47, %v194_v46  ;;  %v296_v54 = vmul.f32 %v1986_v48, %v194_v46  ;;  %996 = vmatmul.mubr.f32.gmra.mxu0 %v703_v42  ;;  %v644_v55 = vadd.f32 %v2001_v53, %v568_v40  ;;  %v643_v61 = vadd.f32 %v1998_v52, %v567_v39 }
  0xe5   :  { %1001 = vmatprep.mubr.f32.mxu0 %v706_v43 }
  0xe6   :  { %v569_v57 = vadd.f32 %v505_v44, %v295_v49  ;;  %v570_v58 = vadd.f32 %v506_v45, %v296_v54  ;;  %v415_v59 = vpop.permute.xlu0 %414  ;;  %v708_v60 = vmax.f32 %v644_v55, 0.0  ;;  %v707_v8 = vmax.f32 %v643_v61, 0.0 }
  0xe7   :  { %v507_v62 = vmul.f32 %v1992_v50, %v415_v59  ;;  %v508_v63 = vmul.f32 %v1995_v51, %v415_v59  ;;  %v199_v0 = vpop.permute.xlu1 %198 }
  0xe8   :  { %v297_v1 = vmul.f32 %v1983_v47, %v199_v0  ;;  %v298_v2 = vmul.f32 %v1986_v48, %v199_v0  ;;  %1002 = vmatmul.mubr.f32.gmra.mxu0 %v705_v56  ;;  %v646_v3 = vadd.f32 %v2001_v53, %v570_v58  ;;  %v645_v4 = vadd.f32 %v1998_v52, %v569_v57 }
  0xe9   :  { %1007 = vmatprep.mubr.f32.mxu0 %v708_v60 }
  0xea   :  { %v571_v5 = vadd.f32 %v507_v62, %v297_v1  ;;  %v572_v6 = vadd.f32 %v508_v63, %v298_v2  ;;  %v419_v7 = vpop.permute.xlu0 %418  ;;  %v710_v9 = vmax.f32 %v646_v3, 0.0  ;;  %v709_v16 = vmax.f32 %v645_v4, 0.0 }
  0xeb   :  { %v509_v10 = vmul.f32 %v1992_v50, %v419_v7  ;;  %v510_v11 = vmul.f32 %v1995_v51, %v419_v7  ;;  %v204_v12 = vpop.permute.xlu1 %203 }
  0xec   :  { %v299_v13 = vmul.f32 %v1983_v47, %v204_v12  ;;  %v300_v14 = vmul.f32 %v1986_v48, %v204_v12  ;;  %1008 = vmatmul.mubr.f32.gmra.mxu0 %v707_v8  ;;  %v648_v15 = vadd.f32 %v2001_v53, %v572_v6  ;;  %v647_v22 = vadd.f32 %v1998_v52, %v571_v5 }
  0xed   :  { %1013 = vmatprep.mubr.f32.mxu0 %v710_v9 }
  0xee   :  { %v573_v17 = vadd.f32 %v509_v10, %v299_v13  ;;  %v574_v18 = vadd.f32 %v510_v11, %v300_v14  ;;  %v423_v19 = vpop.permute.xlu0 %422  ;;  %v712_v21 = vmax.f32 %v648_v15, 0.0  ;;  %v711_v33 = vmax.f32 %v647_v22, 0.0  ;;  %v787_v15 = vld [vmem:[%s2476_s4] sm:$0x3] }
  0xef   :  { %v511_v23 = vmul.f32 %v1992_v50, %v423_v19  ;;  %v512_v24 = vmul.f32 %v1995_v51, %v423_v19  ;;  %v209_v25 = vpop.permute.xlu1 %208 }
  0xf0   :  { %v301_v26 = vmul.f32 %v1983_v47, %v209_v25  ;;  %v302_v27 = vmul.f32 %v1986_v48, %v209_v25  ;;  %1014 = vmatmul.mubr.f32.gmra.mxu0 %v709_v16  ;;  %v650_v28 = vadd.f32 %v2001_v53, %v574_v18  ;;  %v649_v29 = vadd.f32 %v1998_v52, %v573_v17 }
  0xf1   :  { %1019 = vmatprep.mubr.f32.mxu0 %v712_v21  ;;  %v2327_v16 = vrot.slane %v787_v15, %v1967_v34  ;;  %v2330_v17 = vrot.slane %v787_v15, %v1972_v37 }
  0xf2   :  { %v575_v30 = vadd.f32 %v511_v23, %v301_v26  ;;  %v576_v31 = vadd.f32 %v512_v24, %v302_v27  ;;  %v427_v32 = vpop.permute.xlu0 %426  ;;  %v714_v35 = vmax.f32 %v650_v28, 0.0  ;;  %v713_v43 = vmax.f32 %v649_v29, 0.0 }
  0xf3   :  { %v513_v36 = vmul.f32 %v1992_v50, %v427_v32  ;;  %v514_v38 = vmul.f32 %v1995_v51, %v427_v32  ;;  %v214_v39 = vpop.permute.xlu1 %213 }
  0xf4   :  { %v303_v40 = vmul.f32 %v1983_v47, %v214_v39  ;;  %v304_v41 = vmul.f32 %v1986_v48, %v214_v39  ;;  %1020 = vmatmul.mubr.f32.gmra.mxu0 %v711_v33  ;;  %v652_v42 = vadd.f32 %v2001_v53, %v576_v31  ;;  %v651_v54 = vadd.f32 %v1998_v52, %v575_v30 }
  0xf5   :  { %1025 = vmatprep.mubr.f32.mxu0 %v714_v35 }
  0xf6   :  { %v577_v44 = vadd.f32 %v513_v36, %v303_v40  ;;  %v578_v45 = vadd.f32 %v514_v38, %v304_v41  ;;  %v431_v46 = vpop.permute.xlu0 %430  ;;  %v716_v49 = vmax.f32 %v652_v42, 0.0  ;;  %v715_v1 = vmax.f32 %v651_v54, 0.0 }
  0xf7   :  { %v515_v55 = vmul.f32 %v1992_v50, %v431_v46  ;;  %v516_v56 = vmul.f32 %v1995_v51, %v431_v46  ;;  %v219_v57 = vpop.permute.xlu1 %218 }
  0xf8   :  { %v305_v58 = vmul.f32 %v1983_v47, %v219_v57  ;;  %v306_v59 = vmul.f32 %v1986_v48, %v219_v57  ;;  %1026 = vmatmul.mubr.f32.gmra.mxu0 %v713_v43  ;;  %v654_v60 = vadd.f32 %v2001_v53, %v578_v45  ;;  %v653_v61 = vadd.f32 %v1998_v52, %v577_v44 }
  0xf9   :  { %1031 = vmatprep.mubr.f32.mxu0 %v716_v49 }
  0xfa   :  { %v579_v62 = vadd.f32 %v515_v55, %v305_v58  ;;  %v580_v63 = vadd.f32 %v516_v56, %v306_v59  ;;  %v435_v0 = vpop.permute.xlu0 %434  ;;  %v718_v2 = vmax.f32 %v654_v60, 0.0  ;;  %v717_v9 = vmax.f32 %v653_v61, 0.0 }
  0xfb   :  { %v517_v3 = vmul.f32 %v1992_v50, %v435_v0  ;;  %v518_v4 = vmul.f32 %v1995_v51, %v435_v0  ;;  %v224_v5 = vpop.permute.xlu1 %223 }
  0xfc   :  { %v307_v6 = vmul.f32 %v1983_v47, %v224_v5  ;;  %v308_v7 = vmul.f32 %v1986_v48, %v224_v5  ;;  %1032 = vmatmul.mubr.f32.gmra.mxu0 %v715_v1  ;;  %v656_v8 = vadd.f32 %v2001_v53, %v580_v63  ;;  %v655_v13 = vadd.f32 %v1998_v52, %v579_v62 }
  0xfd   :  { %1037 = vmatprep.mubr.f32.mxu0 %v718_v2 }
  0xfe   :  { %v581_v10 = vadd.f32 %v517_v3, %v307_v6  ;;  %v582_v11 = vadd.f32 %v518_v4, %v308_v7  ;;  %v720_v12 = vmax.f32 %v656_v8, 0.0  ;;  %v719_v51 = vmax.f32 %v655_v13, 0.0 }
 0x100   :  { %1038 = vmatmul.mubr.f32.gmra.mxu0 %v717_v9  ;;  %v658_v50 = vadd.f32 %v2001_v53, %v582_v11  ;;  %v657_v47 = vadd.f32 %v1998_v52, %v581_v10 }
 0x101   :  { %1043 = vmatprep.mubr.f32.mxu0 %v720_v12 }
 0x102   :  { %v722_v14 = vmax.f32 %v658_v50, 0.0  ;;  %v721_v48 = vmax.f32 %v657_v47, 0.0 }
 0x104   :  { %1044 = vmatmul.mubr.f32.gmra.mxu0 %v719_v51 }
 0x105   :  { %1049 = vmatprep.mubr.f32.mxu0 %v722_v14 }
 0x108   :  { %1050 = vmatmul.mubr.f32.gmra.mxu0 %v721_v48 }
 0x14c   :  { %v865_v53 = vpop.f32.mrf.mxu0 }
 0x14d   :  { %v866_v18 = vadd.f32 %v865_v53, %v2327_v16 }
 0x14e   :  { %v867_v19 = vpop.f32.mrf.mxu0 }
 0x14f   :  { %v868_v52 = vadd.f32 %v867_v19, %v2330_v17  ;;  %v1056_v23 = vmax.f32 %v866_v18, 0.0 }
 0x150   :  { %v871_v21 = vpop.f32.mrf.mxu0 }
 0x151   :  { %v1057_v22 = vmax.f32 %v868_v52, 0.0  ;;  %v872_v24 = vadd.f32 %v871_v21, %v2327_v16 }
 0x152   :  { %v873_v25 = vpop.f32.mrf.mxu0 }
 0x153   :  { %v874_v26 = vadd.f32 %v873_v25, %v2330_v17  ;;  %1223 = vmatprep.mubr.f32.mxu1 %v1057_v22  ;;  %v1058_v37 = vmax.f32 %v872_v24, 0.0 }
 0x154   :  { %v877_v34 = vpop.f32.mrf.mxu0  ;;  %1224 = vmatmul.mubr.f32.vlgmr.msra.gmra.mxu1 %v1056_v23 }
 0x155   :  { %v1059_v27 = vmax.f32 %v874_v26, 0.0  ;;  %v878_v28 = vadd.f32 %v877_v34, %v2327_v16 }
 0x156   :  { %v879_v29 = vpop.f32.mrf.mxu0 }
 0x157   :  { %v880_v30 = vadd.f32 %v879_v29, %v2330_v17  ;;  %1228 = vmatprep.mubr.f32.mxu1 %v1059_v27  ;;  %v1060_v33 = vmax.f32 %v878_v28, 0.0 }
 0x158   :  { %v883_v31 = vpop.f32.mrf.mxu0  ;;  %1229 = vmatmul.mubr.f32.gmra.mxu1 %v1058_v37 }
 0x159   :  { %v1061_v32 = vmax.f32 %v880_v30, 0.0  ;;  %v884_v35 = vadd.f32 %v883_v31, %v2327_v16 }
 0x15a   :  { %v885_v36 = vpop.f32.mrf.mxu0 }
 0x15b   :  { %v886_v38 = vadd.f32 %v885_v36, %v2330_v17  ;;  %1233 = vmatprep.mubr.f32.mxu1 %v1061_v32  ;;  %v1062_v41 = vmax.f32 %v884_v35, 0.0 }
 0x15c   :  { %v889_v39 = vpop.f32.mrf.mxu0  ;;  %1234 = vmatmul.mubr.f32.gmra.mxu1 %v1060_v33 }
 0x15d   :  { %v1063_v40 = vmax.f32 %v886_v38, 0.0  ;;  %v890_v42 = vadd.f32 %v889_v39, %v2327_v16 }
 0x15e   :  { %v891_v43 = vpop.f32.mrf.mxu0 }
 0x15f   :  { %v892_v44 = vadd.f32 %v891_v43, %v2330_v17  ;;  %1238 = vmatprep.mubr.f32.mxu1 %v1063_v40  ;;  %v1064_v49 = vmax.f32 %v890_v42, 0.0 }
 0x160   :  { %v895_v45 = vpop.f32.mrf.mxu0  ;;  %1239 = vmatmul.mubr.f32.gmra.mxu1 %v1062_v41 }
 0x161   :  { %v1065_v46 = vmax.f32 %v892_v44, 0.0  ;;  %v896_v54 = vadd.f32 %v895_v45, %v2327_v16 }
 0x162   :  { %v897_v55 = vpop.f32.mrf.mxu0 }
 0x163   :  { %v898_v56 = vadd.f32 %v897_v55, %v2330_v17  ;;  %1243 = vmatprep.mubr.f32.mxu1 %v1065_v46  ;;  %v1066_v59 = vmax.f32 %v896_v54, 0.0 }
 0x164   :  { %v901_v57 = vpop.f32.mrf.mxu0  ;;  %1244 = vmatmul.mubr.f32.gmra.mxu1 %v1064_v49 }
 0x165   :  { %v1067_v58 = vmax.f32 %v898_v56, 0.0  ;;  %v902_v60 = vadd.f32 %v901_v57, %v2327_v16 }
 0x166   :  { %v903_v61 = vpop.f32.mrf.mxu0 }
 0x167   :  { %v904_v62 = vadd.f32 %v903_v61, %v2330_v17  ;;  %1248 = vmatprep.mubr.f32.mxu1 %v1067_v58  ;;  %v1068_v1 = vmax.f32 %v902_v60, 0.0 }
 0x168   :  { %v907_v63 = vpop.f32.mrf.mxu0  ;;  %1249 = vmatmul.mubr.f32.gmra.mxu1 %v1066_v59 }
 0x169   :  { %v1069_v0 = vmax.f32 %v904_v62, 0.0  ;;  %v908_v2 = vadd.f32 %v907_v63, %v2327_v16 }
 0x16a   :  { %v909_v3 = vpop.f32.mrf.mxu0 }
 0x16b   :  { %v910_v4 = vadd.f32 %v909_v3, %v2330_v17  ;;  %1253 = vmatprep.mubr.f32.mxu1 %v1069_v0  ;;  %v1070_v7 = vmax.f32 %v908_v2, 0.0 }
 0x16c   :  { %v913_v5 = vpop.f32.mrf.mxu0  ;;  %1254 = vmatmul.mubr.f32.gmra.mxu1 %v1068_v1 }
 0x16d   :  { %v1071_v6 = vmax.f32 %v910_v4, 0.0  ;;  %v914_v8 = vadd.f32 %v913_v5, %v2327_v16 }
 0x16e   :  { %v915_v9 = vpop.f32.mrf.mxu0 }
 0x16f   :  { %v916_v10 = vadd.f32 %v915_v9, %v2330_v17  ;;  %1258 = vmatprep.mubr.f32.mxu1 %v1071_v6  ;;  %v1072_v13 = vmax.f32 %v914_v8, 0.0 }
 0x170   :  { %v919_v11 = vpop.f32.mrf.mxu0  ;;  %1259 = vmatmul.mubr.f32.gmra.mxu1 %v1070_v7 }
 0x171   :  { %v1073_v12 = vmax.f32 %v916_v10, 0.0  ;;  %v920_v50 = vadd.f32 %v919_v11, %v2327_v16 }
 0x172   :  { %v921_v51 = vpop.f32.mrf.mxu0 }
 0x173   :  { %v922_v14 = vadd.f32 %v921_v51, %v2330_v17  ;;  %1263 = vmatprep.mubr.f32.mxu1 %v1073_v12  ;;  %v1074_v15 = vmax.f32 %v920_v50, 0.0 }
 0x174   :  { %v925_v47 = vpop.f32.mrf.mxu0  ;;  %1264 = vmatmul.mubr.f32.gmra.mxu1 %v1072_v13 }
 0x175   :  { %v1075_v48 = vmax.f32 %v922_v14, 0.0  ;;  %v926_v53 = vadd.f32 %v925_v47, %v2327_v16 }
 0x176   :  { %v927_v18 = vpop.f32.mrf.mxu0 }
 0x177   :  { %v928_v19 = vadd.f32 %v927_v18, %v2330_v17  ;;  %1268 = vmatprep.mubr.f32.mxu1 %v1075_v48  ;;  %v1076_v22 = vmax.f32 %v926_v53, 0.0 }
 0x178   :  { %v931_v52 = vpop.f32.mrf.mxu0  ;;  %1269 = vmatmul.mubr.f32.gmra.mxu1 %v1074_v15 }
 0x179   :  { %v1077_v21 = vmax.f32 %v928_v19, 0.0  ;;  %v932_v23 = vadd.f32 %v931_v52, %v2327_v16 }
 0x17a   :  { %v933_v24 = vpop.f32.mrf.mxu0 }
 0x17b   :  { %v934_v25 = vadd.f32 %v933_v24, %v2330_v17  ;;  %1273 = vmatprep.mubr.f32.mxu1 %v1077_v21  ;;  %v1078_v27 = vmax.f32 %v932_v23, 0.0 }
 0x17c   :  { %v937_v26 = vpop.f32.mrf.mxu0  ;;  %1274 = vmatmul.mubr.f32.gmra.mxu1 %v1076_v22 }
 0x17d   :  { %v1079_v34 = vmax.f32 %v934_v25, 0.0  ;;  %v938_v37 = vadd.f32 %v937_v26, %v2327_v16 }
 0x17e   :  { %v939_v28 = vpop.f32.mrf.mxu0 }
 0x17f   :  { %v940_v29 = vadd.f32 %v939_v28, %v2330_v17  ;;  %1278 = vmatprep.mubr.f32.mxu1 %v1079_v34  ;;  %v1080_v32 = vmax.f32 %v938_v37, 0.0 }
 0x180   :  { %v943_v30 = vpop.f32.mrf.mxu0  ;;  %1279 = vmatmul.mubr.f32.gmra.mxu1 %v1078_v27 }
 0x181   :  { %v1081_v31 = vmax.f32 %v940_v29, 0.0  ;;  %v944_v33 = vadd.f32 %v943_v30, %v2327_v16 }
 0x182   :  { %v945_v35 = vpop.f32.mrf.mxu0 }
 0x183   :  { %v946_v36 = vadd.f32 %v945_v35, %v2330_v17  ;;  %1283 = vmatprep.mubr.f32.mxu1 %v1081_v31  ;;  %v1082_v40 = vmax.f32 %v944_v33, 0.0 }
 0x184   :  { %v949_v38 = vpop.f32.mrf.mxu0  ;;  %1284 = vmatmul.mubr.f32.gmra.mxu1 %v1080_v32 }
 0x185   :  { %v1083_v39 = vmax.f32 %v946_v36, 0.0  ;;  %v950_v41 = vadd.f32 %v949_v38, %v2327_v16 }
 0x186   :  { %v951_v42 = vpop.f32.mrf.mxu0 }
 0x187   :  { %v952_v43 = vadd.f32 %v951_v42, %v2330_v17  ;;  %1288 = vmatprep.mubr.f32.mxu1 %v1083_v39  ;;  %v1084_v46 = vmax.f32 %v950_v41, 0.0 }
 0x188   :  { %v955_v44 = vpop.f32.mrf.mxu0  ;;  %1289 = vmatmul.mubr.f32.gmra.mxu1 %v1082_v40 }
 0x189   :  { %v1085_v45 = vmax.f32 %v952_v43, 0.0  ;;  %v956_v49 = vadd.f32 %v955_v44, %v2327_v16 }
 0x18a   :  { %v957_v54 = vpop.f32.mrf.mxu0 }
 0x18b   :  { %v958_v55 = vadd.f32 %v957_v54, %v2330_v17  ;;  %1293 = vmatprep.mubr.f32.mxu1 %v1085_v45  ;;  %v1086_v58 = vmax.f32 %v956_v49, 0.0 }
 0x18c   :  { %v961_v56 = vpop.f32.mrf.mxu0  ;;  %1294 = vmatmul.mubr.f32.gmra.mxu1 %v1084_v46 }
 0x18d   :  { %v1087_v57 = vmax.f32 %v958_v55, 0.0  ;;  %v962_v59 = vadd.f32 %v961_v56, %v2327_v16 }
 0x18e   :  { %v963_v60 = vpop.f32.mrf.mxu0 }
 0x18f   :  { %v964_v61 = vadd.f32 %v963_v60, %v2330_v17  ;;  %1298 = vmatprep.mubr.f32.mxu1 %v1087_v57  ;;  %v1088_v0 = vmax.f32 %v962_v59, 0.0 }
 0x190   :  { %v967_v62 = vpop.f32.mrf.mxu0  ;;  %1299 = vmatmul.mubr.f32.gmra.mxu1 %v1086_v58 }
 0x191   :  { %v1089_v63 = vmax.f32 %v964_v61, 0.0  ;;  %v968_v1 = vadd.f32 %v967_v62, %v2327_v16 }
 0x192   :  { %v969_v2 = vpop.f32.mrf.mxu0 }
 0x193   :  { %v970_v3 = vadd.f32 %v969_v2, %v2330_v17  ;;  %1303 = vmatprep.mubr.f32.mxu1 %v1089_v63  ;;  %v1090_v6 = vmax.f32 %v968_v1, 0.0 }
 0x194   :  { %v973_v4 = vpop.f32.mrf.mxu0  ;;  %1304 = vmatmul.mubr.f32.gmra.mxu1 %v1088_v0 }
 0x195   :  { %v1091_v5 = vmax.f32 %v970_v3, 0.0  ;;  %v974_v7 = vadd.f32 %v973_v4, %v2327_v16 }
 0x196   :  { %v975_v8 = vpop.f32.mrf.mxu0 }
 0x197   :  { %v976_v9 = vadd.f32 %v975_v8, %v2330_v17  ;;  %1308 = vmatprep.mubr.f32.mxu1 %v1091_v5  ;;  %v1092_v12 = vmax.f32 %v974_v7, 0.0 }
 0x198   :  { %v979_v10 = vpop.f32.mrf.mxu0  ;;  %1309 = vmatmul.mubr.f32.gmra.mxu1 %v1090_v6 }
 0x199   :  { %v1093_v11 = vmax.f32 %v976_v9, 0.0  ;;  %v980_v13 = vadd.f32 %v979_v10, %v2327_v16 }
 0x19a   :  { %v981_v50 = vpop.f32.mrf.mxu0 }
 0x19b   :  { %v982_v51 = vadd.f32 %v981_v50, %v2330_v17  ;;  %1313 = vmatprep.mubr.f32.mxu1 %v1093_v11  ;;  %v1094_v48 = vmax.f32 %v980_v13, 0.0 }
 0x19c   :  { %v985_v14 = vpop.f32.mrf.mxu0  ;;  %1314 = vmatmul.mubr.f32.gmra.mxu1 %v1092_v12 }
 0x19d   :  { %v1095_v47 = vmax.f32 %v982_v51, 0.0  ;;  %v986_v15 = vadd.f32 %v985_v14, %v2327_v16 }
 0x19e   :  { %v987_v53 = vpop.f32.mrf.mxu0 }
 0x19f   :  { %v988_v18 = vadd.f32 %v987_v53, %v2330_v17  ;;  %1318 = vmatprep.mubr.f32.mxu1 %v1095_v47  ;;  %v1096_v21 = vmax.f32 %v986_v15, 0.0 }
 0x1a0   :  { %v991_v19 = vpop.f32.mrf.mxu0  ;;  %1319 = vmatmul.mubr.f32.gmra.mxu1 %v1094_v48 }
 0x1a1   :  { %v1097_v52 = vmax.f32 %v988_v18, 0.0  ;;  %v992_v22 = vadd.f32 %v991_v19, %v2327_v16 }
 0x1a2   :  { %v993_v23 = vpop.f32.mrf.mxu0 }
 0x1a3   :  { %v994_v24 = vadd.f32 %v993_v23, %v2330_v17  ;;  %1323 = vmatprep.mubr.f32.mxu1 %v1097_v52  ;;  %v1098_v34 = vmax.f32 %v992_v22, 0.0 }
 0x1a4   :  { %v997_v25 = vpop.f32.mrf.mxu0  ;;  %1324 = vmatmul.mubr.f32.gmra.mxu1 %v1096_v21 }
 0x1a5   :  { %v1099_v26 = vmax.f32 %v994_v24, 0.0  ;;  %v998_v27 = vadd.f32 %v997_v25, %v2327_v16 }
 0x1a6   :  { %v999_v37 = vpop.f32.mrf.mxu0 }
 0x1a7   :  { %v1000_v28 = vadd.f32 %v999_v37, %v2330_v17  ;;  %1328 = vmatprep.mubr.f32.mxu1 %v1099_v26  ;;  %v1100_v31 = vmax.f32 %v998_v27, 0.0 }
 0x1a8   :  { %v1003_v29 = vpop.f32.mrf.mxu0  ;;  %1329 = vmatmul.mubr.f32.gmra.mxu1 %v1098_v34 }
 0x1a9   :  { %v1101_v30 = vmax.f32 %v1000_v28, 0.0  ;;  %v1004_v32 = vadd.f32 %v1003_v29, %v2327_v16 }
 0x1aa   :  { %v1005_v33 = vpop.f32.mrf.mxu0 }
 0x1ab   :  { %v1006_v35 = vadd.f32 %v1005_v33, %v2330_v17  ;;  %1333 = vmatprep.mubr.f32.mxu1 %v1101_v30  ;;  %v1102_v39 = vmax.f32 %v1004_v32, 0.0 }
 0x1ac   :  { %v1009_v36 = vpop.f32.mrf.mxu0  ;;  %1334 = vmatmul.mubr.f32.gmra.mxu1 %v1100_v31 }
 0x1ad   :  { %v1103_v38 = vmax.f32 %v1006_v35, 0.0  ;;  %v1010_v40 = vadd.f32 %v1009_v36, %v2327_v16 }
 0x1ae   :  { %v1011_v41 = vpop.f32.mrf.mxu0 }
 0x1af   :  { %v1012_v42 = vadd.f32 %v1011_v41, %v2330_v17  ;;  %1338 = vmatprep.mubr.f32.mxu1 %v1103_v38  ;;  %v1104_v45 = vmax.f32 %v1010_v40, 0.0 }
 0x1b0   :  { %v1015_v43 = vpop.f32.mrf.mxu0  ;;  %1339 = vmatmul.mubr.f32.gmra.mxu1 %v1102_v39 }
 0x1b1   :  { %v1105_v44 = vmax.f32 %v1012_v42, 0.0  ;;  %v1016_v46 = vadd.f32 %v1015_v43, %v2327_v16 }
 0x1b2   :  { %v1017_v49 = vpop.f32.mrf.mxu0 }
 0x1b3   :  { %v1018_v54 = vadd.f32 %v1017_v49, %v2330_v17  ;;  %1343 = vmatprep.mubr.f32.mxu1 %v1105_v44  ;;  %v1106_v57 = vmax.f32 %v1016_v46, 0.0 }
 0x1b4   :  { %v1021_v55 = vpop.f32.mrf.mxu0  ;;  %1344 = vmatmul.mubr.f32.gmra.mxu1 %v1104_v45 }
 0x1b5   :  { %v1107_v56 = vmax.f32 %v1018_v54, 0.0  ;;  %v1022_v58 = vadd.f32 %v1021_v55, %v2327_v16 }
 0x1b6   :  { %v1023_v59 = vpop.f32.mrf.mxu0 }
 0x1b7   :  { %v1024_v60 = vadd.f32 %v1023_v59, %v2330_v17  ;;  %1348 = vmatprep.mubr.f32.mxu1 %v1107_v56  ;;  %v1108_v63 = vmax.f32 %v1022_v58, 0.0  ;;  %v2401_v59 = vld [vmem:[%s2478_s6] ss:$0 sm:$0xff]  ;;  %s1644_s6 = smov [#allocation2]  }
 0x1b8   :  { %v1027_v61 = vpop.f32.mrf.mxu0  ;;  %1349 = vmatmul.mubr.f32.gmra.mxu1 %v1106_v57  ;;  %s1601_s20 = sshll.u32 %s1644_s6, 4  ;;  %s1602_s20 = int_to_ptr.vmem [resolvable:$true] %s1601_s20 }
 0x1b9   :  { %v1109_v62 = vmax.f32 %v1024_v60, 0.0  ;;  %v1028_v0 = vadd.f32 %v1027_v61, %v2327_v16  ;;  %s1619_s21 = scalar_lea.vmem %s1602_s20, 16  ;;  %s1623_s22 = scalar_lea.vmem %s1602_s20, 32 }
 0x1ba   :  { %v1029_v1 = vpop.f32.mrf.mxu0  ;;  %p1620_p0 = scmp.ne.s32.totalorder %s1602_s20, %s1619_s21  ;;  %p1624_p1 = scmp.lt.s32.totalorder %s1602_s20, %s1602_s20 }
 0x1bb   :  { %v1030_v2 = vadd.f32 %v1029_v1, %v2330_v17  ;;  %1353 = vmatprep.mubr.f32.mxu1 %v1109_v62  ;;  %v1110_v5 = vmax.f32 %v1028_v0, 0.0  ;;  %p1625_p2 = scmp.lt.s32.totalorder %s1623_s22, %s1619_s21 }
 0x1bc   :  { %v1033_v3 = vpop.f32.mrf.mxu0  ;;  %1354 = vmatmul.mubr.f32.gmra.mxu1 %v1108_v63 }
 0x1bd   :  { %v1111_v4 = vmax.f32 %v1030_v2, 0.0  ;;  %v1034_v6 = vadd.f32 %v1033_v3, %v2327_v16  ;;  %p1626_p3 = por %p1625_p2, %p1624_p1 }
 0x1be   :  { %v1035_v7 = vpop.f32.mrf.mxu0 }
 0x1bf   :  { %v1036_v8 = vadd.f32 %v1035_v7, %v2330_v17  ;;  %1358 = vmatprep.mubr.f32.mxu1 %v1111_v4  ;;  %v1112_v11 = vmax.f32 %v1034_v6, 0.0  ;;  %p1627_p4 = pnand %p1626_p3, %p1620_p0 }
 0x1c0   :  { %v1039_v9 = vpop.f32.mrf.mxu0  ;;  %1359 = vmatmul.mubr.f32.gmra.mxu1 %v1110_v5 }
 0x1c1   :  { %v1113_v10 = vmax.f32 %v1036_v8, 0.0  ;;  %v1040_v12 = vadd.f32 %v1039_v9, %v2327_v16 }
 0x1c2   :  { %v1041_v13 = vpop.f32.mrf.mxu0 }
 0x1c3   :  { %v1042_v50 = vadd.f32 %v1041_v13, %v2330_v17  ;;  %1363 = vmatprep.mubr.f32.mxu1 %v1113_v10  ;;  %v1114_v47 = vmax.f32 %v1040_v12, 0.0 }
 0x1c4   :  { %v1045_v51 = vpop.f32.mrf.mxu0  ;;  %1364 = vmatmul.mubr.f32.gmra.mxu1 %v1112_v11 }
 0x1c5   :  { %v1115_v14 = vmax.f32 %v1042_v50, 0.0  ;;  %v1046_v48 = vadd.f32 %v1045_v51, %v2327_v16 }
 0x1c6   :  { %v1047_v15 = vpop.f32.mrf.mxu0 }
 0x1c7   :  { %v1048_v53 = vadd.f32 %v1047_v15, %v2330_v17  ;;  %1368 = vmatprep.mubr.f32.mxu1 %v1115_v14  ;;  %v1116_v52 = vmax.f32 %v1046_v48, 0.0 }
 0x1c8   :  { %v1051_v18 = vpop.f32.mrf.mxu0  ;;  %1369 = vmatmul.mubr.f32.gmra.mxu1 %v1114_v47 }
 0x1c9   :  { %v1117_v19 = vmax.f32 %v1048_v53, 0.0  ;;  %v1052_v21 = vadd.f32 %v1051_v18, %v2327_v16 }
 0x1ca   :  { %v1053_v22 = vpop.f32.mrf.mxu0 }
 0x1cb   :  { %v1054_v23 = vadd.f32 %v1053_v22, %v2330_v17  ;;  %1373 = vmatprep.mubr.f32.mxu1 %v1117_v19  ;;  %v1118_v25 = vmax.f32 %v1052_v21, 0.0 }
 0x1cc   :  { %1374 = vmatmul.mubr.f32.gmra.mxu1 %v1116_v52 }
 0x1cd   :  { %v1119_v24 = vmax.f32 %v1054_v23, 0.0 }
 0x1cf   :  { %1378 = vmatprep.mubr.f32.mxu1 %v1119_v24 }
 0x1d0   :  { %1379 = vmatmul.mubr.f32.gmra.mxu1 %v1118_v25 }
 0x214   :  { %v1225_v26 = vpop.f32.mrf.mxu1 }
 0x215   :  { %v1226_v63 = vadd.f32 %v2401_v59, %v1225_v26 }
 0x216   :  { %v1227_v34 = vpop.f32.mrf.mxu1 }
 0x217   :  { %v1517_v5 = vsel %vm1516_vm1, %v1226_v63, 0.0 }
 0x218   :  { %v1230_v27 = vpop.f32.mrf.mxu1 }
 0x219   :  { %v1231_v61 = vadd.f32 %v2401_v59, %v1230_v27 }
 0x21a   :  { %v1232_v37 = vpop.f32.mrf.mxu1 }
 0x21b   :  { %v1518_v2 = vsel %vm1516_vm1, %v1231_v61, 0.0 }
 0x21c   :  { %v1235_v28 = vpop.f32.mrf.mxu1  ;;  %v1519_v8 = vadd.f32 %v1518_v2, %v1517_v5 }
 0x21d   :  { %v1236_v0 = vadd.f32 %v2401_v59, %v1235_v28 }
 0x21e   :  { %v1237_v29 = vpop.f32.mrf.mxu1 }
 0x21f   :  { %v1520_v6 = vsel %vm1516_vm1, %v1236_v0, 0.0 }
 0x220   :  { %v1240_v16 = vpop.f32.mrf.mxu1  ;;  %v1521_v12 = vadd.f32 %v1520_v6, %v1519_v8 }
 0x221   :  { %v1241_v3 = vadd.f32 %v2401_v59, %v1240_v16 }
 0x222   :  { %v1242_v30 = vpop.f32.mrf.mxu1 }
 0x223   :  { %v1522_v10 = vsel %vm1516_vm1, %v1241_v3, 0.0 }
 0x224   :  { %v1245_v31 = vpop.f32.mrf.mxu1  ;;  %v1523_v14 = vadd.f32 %v1522_v10, %v1521_v12 }
 0x225   :  { %v1246_v7 = vadd.f32 %v2401_v59, %v1245_v31 }
 0x226   :  { %v1247_v17 = vpop.f32.mrf.mxu1 }
 0x227   :  { %v1524_v50 = vsel %vm1516_vm1, %v1246_v7, 0.0 }
 0x228   :  { %v1250_v32 = vpop.f32.mrf.mxu1  ;;  %v1525_v53 = vadd.f32 %v1524_v50, %v1523_v14 }
 0x229   :  { %v1251_v11 = vadd.f32 %v2401_v59, %v1250_v32 }
 0x22a   :  { %v1252_v33 = vpop.f32.mrf.mxu1 }
 0x22b   :  { %v1526_v48 = vsel %vm1516_vm1, %v1251_v11, 0.0 }
 0x22c   :  { %v1255_v35 = vpop.f32.mrf.mxu1  ;;  %v1527_v21 = vadd.f32 %v1526_v48, %v1525_v53 }
 0x22d   :  { %v1256_v51 = vadd.f32 %v2401_v59, %v1255_v35 }
 0x22e   :  { %v1257_v36 = vpop.f32.mrf.mxu1 }
 0x22f   :  { %v1528_v19 = vsel %vm1516_vm1, %v1256_v51, 0.0 }
 0x230   :  { %v1260_v38 = vpop.f32.mrf.mxu1  ;;  %v1529_v25 = vadd.f32 %v1528_v19, %v1527_v21 }
 0x231   :  { %v1261_v15 = vadd.f32 %v2401_v59, %v1260_v38 }
 0x232   :  { %v1262_v39 = vpop.f32.mrf.mxu1 }
 0x233   :  { %v1530_v23 = vsel %vm1516_vm1, %v1261_v15, 0.0 }
 0x234   :  { %v1265_v40 = vpop.f32.mrf.mxu1  ;;  %v1531_v37 = vadd.f32 %v1530_v23, %v1529_v25 }
 0x235   :  { %v1266_v52 = vadd.f32 %v2401_v59, %v1265_v40 }
 0x236   :  { %v1267_v41 = vpop.f32.mrf.mxu1 }
 0x237   :  { %v1532_v34 = vsel %vm1516_vm1, %v1266_v52, 0.0 }
 0x238   :  { %v1270_v42 = vpop.f32.mrf.mxu1  ;;  %v1533_v30 = vadd.f32 %v1532_v34, %v1531_v37 }
 0x239   :  { %v1271_v24 = vadd.f32 %v2401_v59, %v1270_v42 }
 0x23a   :  { %v1272_v43 = vpop.f32.mrf.mxu1 }
 0x23b   :  { %v1534_v29 = vsel %vm1516_vm1, %v1271_v24, 0.0 }
 0x23c   :  { %v1275_v44 = vpop.f32.mrf.mxu1  ;;  %v1535_v33 = vadd.f32 %v1534_v29, %v1533_v30 }
 0x23d   :  { %v1276_v27 = vadd.f32 %v2401_v59, %v1275_v44 }
 0x23e   :  { %v1277_v45 = vpop.f32.mrf.mxu1 }
 0x23f   :  { %v1536_v17 = vsel %vm1516_vm1, %v1276_v27, 0.0 }
 0x240   :  { %v1280_v46 = vpop.f32.mrf.mxu1  ;;  %v1537_v39 = vadd.f32 %v1536_v17, %v1535_v33 }
 0x241   :  { %v1281_v16 = vadd.f32 %v2401_v59, %v1280_v46 }
 0x242   :  { %v1282_v20 = vpop.f32.mrf.mxu1 }
 0x243   :  { %v1538_v36 = vsel %vm1516_vm1, %v1281_v16, 0.0 }
 0x244   :  { %v1285_v49 = vpop.f32.mrf.mxu1  ;;  %v1539_v43 = vadd.f32 %v1538_v36, %v1537_v39 }
 0x245   :  { %v1286_v32 = vadd.f32 %v2401_v59, %v1285_v49 }
 0x246   :  { %v1287_v54 = vpop.f32.mrf.mxu1 }
 0x247   :  { %v1540_v41 = vsel %vm1516_vm1, %v1286_v32, 0.0 }
 0x248   :  { %v1290_v55 = vpop.f32.mrf.mxu1  ;;  %v1541_v20 = vadd.f32 %v1540_v41, %v1539_v43 }
 0x249   :  { %v1291_v38 = vadd.f32 %v2401_v59, %v1290_v55 }
 0x24a   :  { %v1292_v56 = vpop.f32.mrf.mxu1 }
 0x24b   :  { %v1542_v45 = vsel %vm1516_vm1, %v1291_v38, 0.0 }
 0x24c   :  { %v1295_v57 = vpop.f32.mrf.mxu1 }
 0x24d   :  { %v1296_v42 = vadd.f32 %v2401_v59, %v1295_v57 }
 0x24e   :  { %v1297_v58 = vpop.f32.mrf.mxu1 }
 0x24f   :  { %v1544_v54 = vsel %vm1516_vm1, %v1296_v42, 0.0  ;;  %v1543_v58 = vadd.f32 %v1542_v45, %v1541_v20 }
 0x250   :  { %v1300_v60 = vpop.f32.mrf.mxu1 }
 0x251   :  { %v1301_v46 = vadd.f32 %v2401_v59, %v1300_v60  ;;  %v1545_v63 = vadd.f32 %v1544_v54, %v1543_v58 }
 0x252   :  { %v1302_v62 = vpop.f32.mrf.mxu1 }
 0x253   :  { %v1546_v61 = vsel %vm1516_vm1, %v1301_v46, 0.0 }
 0x254   :  { %v1305_v1 = vpop.f32.mrf.mxu1  ;;  %v1547_v3 = vadd.f32 %v1546_v61, %v1545_v63 }
 0x255   :  { %v1306_v56 = vadd.f32 %v2401_v59, %v1305_v1 }
 0x256   :  { %v1307_v4 = vpop.f32.mrf.mxu1 }
 0x257   :  { %v1548_v0 = vsel %vm1516_vm1, %v1306_v56, 0.0 }
 0x258   :  { %v1310_v9 = vpop.f32.mrf.mxu1  ;;  %v1549_v6 = vadd.f32 %v1548_v0, %v1547_v3 }
 0x259   :  { %v1311_v62 = vadd.f32 %v2401_v59, %v1310_v9 }
 0x25a   :  { %v1312_v13 = vpop.f32.mrf.mxu1 }
 0x25b   :  { %v1550_v4 = vsel %vm1516_vm1, %v1311_v62, 0.0 }
 0x25c   :  { %v1315_v47 = vpop.f32.mrf.mxu1  ;;  %v1551_v10 = vadd.f32 %v1550_v4, %v1549_v6 }
 0x25d   :  { %v1316_v2 = vadd.f32 %v2401_v59, %v1315_v47 }
 0x25e   :  { %v1317_v18 = vpop.f32.mrf.mxu1 }
 0x25f   :  { %v1552_v7 = vsel %vm1516_vm1, %v1316_v2, 0.0 }
 0x260   :  { %v1320_v22 = vpop.f32.mrf.mxu1  ;;  %v1553_v13 = vadd.f32 %v1552_v7, %v1551_v10 }
 0x261   :  { %v1321_v5 = vadd.f32 %v2401_v59, %v1320_v22 }
 0x262   :  { %v1322_v26 = vpop.f32.mrf.mxu1 }
 0x263   :  { %v1554_v11 = vsel %vm1516_vm1, %v1321_v5, 0.0  ;;  %v1515_v5 = vld [vmem:[#allocation2] sm:$0x1] }
 0x264   :  { %v1325_v28 = vpop.f32.mrf.mxu1  ;;  %v1555_v47 = vadd.f32 %v1554_v11, %v1553_v13 }
 0x265   :  { %v1326_v8 = vadd.f32 %v2401_v59, %v1325_v28 }
 0x266   :  { %v1327_v31 = vpop.f32.mrf.mxu1 }
 0x267   :  { %v1556_v51 = vsel %vm1516_vm1, %v1326_v8, 0.0 }
 0x268   :  { %v1330_v35 = vpop.f32.mrf.mxu1  ;;  %v1557_v18 = vadd.f32 %v1556_v51, %v1555_v47 }
 0x269   :  { %v1331_v12 = vadd.f32 %v2401_v59, %v1330_v35 }
 0x26a   :  { %v1332_v40 = vpop.f32.mrf.mxu1 }
 0x26b   :  { %v1558_v15 = vsel %vm1516_vm1, %v1331_v12, 0.0 }
 0x26c   :  { %v1335_v44 = vpop.f32.mrf.mxu1  ;;  %v1559_v22 = vadd.f32 %v1558_v15, %v1557_v18 }
 0x26d   :  { %v1336_v14 = vadd.f32 %v2401_v59, %v1335_v44 }
 0x26e   :  { %v1337_v49 = vpop.f32.mrf.mxu1 }
 0x26f   :  { %v1560_v52 = vsel %vm1516_vm1, %v1336_v14, 0.0 }
 0x270   :  { %v1340_v55 = vpop.f32.mrf.mxu1  ;;  %v1561_v26 = vadd.f32 %v1560_v52, %v1559_v22 }
 0x271   :  { %v1341_v53 = vadd.f32 %v2401_v59, %v1340_v55 }
 0x272   :  { %v1342_v57 = vpop.f32.mrf.mxu1 }
 0x273   :  { %v1562_v24 = vsel %vm1516_vm1, %v1341_v53, 0.0 }
 0x274   :  { %v1345_v60 = vpop.f32.mrf.mxu1  ;;  %v1563_v28 = vadd.f32 %v1562_v24, %v1561_v26 }
 0x275   :  { %v1346_v21 = vadd.f32 %v2401_v59, %v1345_v60 }
 0x276   :  { %v1347_v1 = vpop.f32.mrf.mxu1 }
 0x277   :  { %v1564_v27 = vsel %vm1516_vm1, %v1346_v21, 0.0 }
 0x278   :  { %v1350_v9 = vpop.f32.mrf.mxu1  ;;  %v1565_v31 = vadd.f32 %v1564_v27, %v1563_v28 }
 0x279   :  { %v1351_v25 = vadd.f32 %v2401_v59, %v1350_v9 }
 0x27a   :  { %v1352_v50 = vpop.f32.mrf.mxu1 }
 0x27b   :  { %v1566_v16 = vsel %vm1516_vm1, %v1351_v25, 0.0 }
 0x27c   :  { %v1355_v48 = vpop.f32.mrf.mxu1  ;;  %v1567_v35 = vadd.f32 %v1566_v16, %v1565_v31 }
 0x27d   :  { %v1356_v37 = vadd.f32 %v2401_v59, %v1355_v48 }
 0x27e   :  { %v1357_v19 = vpop.f32.mrf.mxu1 }
 0x27f   :  { %v1568_v32 = vsel %vm1516_vm1, %v1356_v37, 0.0 }
 0x280   :  { %v1360_v23 = vpop.f32.mrf.mxu1  ;;  %v1569_v40 = vadd.f32 %v1568_v32, %v1567_v35 }
 0x281   :  { %v1361_v30 = vadd.f32 %v2401_v59, %v1360_v23 }
 0x282   :  { %v1362_v34 = vpop.f32.mrf.mxu1 }
 0x283   :  { %v1570_v38 = vsel %vm1516_vm1, %v1361_v30, 0.0 }
 0x284   :  { %v1365_v29 = vpop.f32.mrf.mxu1  ;;  %v1571_v43 = vadd.f32 %v1570_v38, %v1569_v40 }
 0x285   :  { %v1366_v33 = vadd.f32 %v2401_v59, %v1365_v29 }
 0x286   :  { %v1367_v17 = vpop.f32.mrf.mxu1 }
 0x287   :  { %v1572_v42 = vsel %vm1516_vm1, %v1366_v33, 0.0 }
 0x288   :  { %v1370_v36 = vpop.f32.mrf.mxu1  ;;  %v1573_v20 = vadd.f32 %v1572_v42, %v1571_v43 }
 0x289   :  { %v1371_v39 = vadd.f32 %v2401_v59, %v1370_v36 }
 0x28a   :  { %v1372_v41 = vpop.f32.mrf.mxu1 }
 0x28b   :  { %v1574_v45 = vsel %vm1516_vm1, %v1371_v39, 0.0 }
 0x28c   :  { %v1375_v44 = vpop.f32.mrf.mxu1  ;;  %v1575_v56 = vadd.f32 %v1574_v45, %v1573_v20 }
 0x28d   :  { %v1376_v46 = vadd.f32 %v2401_v59, %v1375_v44 }
 0x28e   :  { %v1377_v49 = vpop.f32.mrf.mxu1 }
 0x28f   :  { %v1576_v54 = vsel %vm1516_vm1, %v1376_v46, 0.0 }
 0x290   :  { %v1380_v58 = vpop.f32.mrf.mxu1  ;;  %v1577_v61 = vadd.f32 %v1576_v54, %v1575_v56 }
 0x291   :  { %v1381_v55 = vadd.f32 %v2401_v59, %v1380_v58 }
 0x292   :  { %v1382_v62 = vpop.f32.mrf.mxu1 }
 0x293   :  { %v1578_v63 = vsel %vm1516_vm1, %v1381_v55, 0.0 }
 0x294   :  { %v1579_v57 = vadd.f32 %v1578_v63, %v1577_v61 }
 0x296   :  { %v1580_v0 = vrot.slane %v1579_v57, 4 }
 0x298   :  { %v1581_v2 = vadd.f32 %v1580_v0, %v1579_v57 }
 0x29a   :  { %v1582_v3 = vrot.slane %v1581_v2, 2 }
 0x29c   :  { %v1583_v60 = vadd.f32 %v1582_v3, %v1581_v2 }
 0x29e   :  { %v1584_v4 = vrot.slane %v1583_v60, 1 }
 0x2a0   :  { %v1585_v6 = vadd.f32 %v1584_v4, %v1583_v60 }
 0x2a2   :  { %v1586_v1 = vadd.f32 %v1585_v6, %v1515_v5 }
 0x2a4   :  { %1588 = vst.msk [vmem:[#allocation2] sm:$0x1] %vm31_vm0, %v1586_v1 }
 0x2ab   :  { %v1592_v7 = vld [vmem:[#allocation2] sm:$0x1] }
 0x2ac   :  { %v1593_v8 = vmul.f32 0.00390625, %v1592_v7 }
 0x2ae   :  { %1594 = vst.msk [vmem:[#allocation2] sm:$0x1] %vm31_vm0, %v1593_v8 }
 0x2af   :  { %1630 = shalt.err (!%p1627_p4)
}
 0x2b0   :  { %1604 = dma.vmem_to_hbm [thread:$0]  %s1602_s20, 16, %s2479_s7, [#allocation3]  }
 0x2b1   :  { %1639 = dma.done.wait [#allocation3], 16  }
 0x2b2   :  { %1640 = vsyncadd [#allocation3], 4294967280 }
 0x2b3   :  { %1608 = vsyncpa [#allocation3], 1 }

</bundles_post_ra>
